<compile_context>
chip_gen: v7x
topology: tpu7x:2x2x1
jax: 0.10.0
libtpu: 0.0.40
codegen_flags: <defaults>
</compile_context>

<pallas_src>
import math

import jax
import jax.numpy as jnp
from jax.experimental import pallas as pl
from jax.experimental.pallas import tpu as pltpu

H = 768        # hidden size is hardcoded in Bert_QA (start/end classifiers are 768-d)
B = 2          # batch
S = 8          # sequence length of the QA modeling output
N_SUPPORT = 4  # number of support datasets / modules

_INV_SQRT_H = 1.0 / math.sqrt(768.0)
_TK = H // 2   # contraction-block size for the pipelined clf_t @ A matmul (2 steps)


def _bert_qa_head_kernel(clf_ref, a_ref, beff_ref, sup_ref, qa_ref,
                         wc_ref, bc_ref, wse_ref, label_ref, tse_ref,
                         out_ref, acc_ref):
    f32 = jnp.float32
    bf16 = jnp.bfloat16
    k = pl.program_id(0)

    # ---- pipelined (B,H)x(H,H) bilinear-query matmul: acc += clf_blk @ A_blk -------
    @pl.when(k == 0)
    def _():
        acc_ref[...] = jnp.zeros_like(acc_ref)

    acc_ref[...] += jnp.dot(clf_ref[...], a_ref[...],
                            preferred_element_type=f32)                      # (B, H)

    # ---- finalize: attention, clf head, span heads, losses -------------------------
    @pl.when(k == pl.num_programs(0) - 1)
    def _():
        sup = sup_ref[...]                 # (N, B, H) f32  stacked support values
        lab = label_ref[...]               # (B, 2)    f32

        # qA = clf_t @ (Wq Wk^T) + bq Wk^T ; score = sup . qA  (softmax-equivalent to
        # the original query.key score — per-batch constant terms dropped).
        qA = acc_ref[...] + beff_ref[...]                                     # (B, H)
        score = jnp.sum(qA[None, :, :] * sup, axis=-1,
                        keepdims=True) * f32(_INV_SQRT_H)                     # (N, B, 1)

        # softmax over the support axis (axis 0) — f32 VPU/EUP work.
        m = jnp.max(score, axis=0, keepdims=True)
        e = jnp.exp(score - m)
        att = e / jnp.sum(e, axis=0, keepdims=True)                           # (N, B, 1)

        # weighted sum of support values.
        output_clf = jnp.sum(att * sup, axis=0)                               # (B, H)

        # classification head + softmax probabilities (bf16 MXU, f32 accumulate).
        clf_score = jnp.dot(output_clf.astype(bf16), wc_ref[...],
                            preferred_element_type=f32) + bc_ref[...]         # (B, 2)
        cm = jnp.max(clf_score, axis=-1, keepdims=True)
        ce = jnp.exp(clf_score - cm)
        csum = jnp.sum(ce, axis=-1, keepdims=True)
        prob = ce / csum                                                      # (B, 2)

        # label loss: soft-target CE, mean over batch (reuses the softmax pieces).
        logp_clf = clf_score - (jnp.log(csum) + cm)
        per_lab = -jnp.sum(lab * logp_clf, axis=-1, keepdims=True)            # (B, 1)
        loss_label = jnp.sum(per_lab, axis=0, keepdims=True) / f32(B)         # (1, 1)

        # start / end span scores: single (B*S,H)x(H,2) bf16 MXU matmul.
        se = jnp.dot(qa_ref[...], wse_ref[...],
                     preferred_element_type=f32).reshape(B, S, 2)             # (B, S, 2)

        # soft-target CE over the sequence axis for both heads at once (f32 math).
        sm = jnp.max(se, axis=1, keepdims=True)                               # (B, 1, 2)
        slse = jnp.log(jnp.sum(jnp.exp(se - sm), axis=1, keepdims=True)) + sm
        per_se = -jnp.sum(tse_ref[...] * (se - slse), axis=1, keepdims=True)  # (B, 1, 2)
        loss_se = jnp.sum(jnp.sum(per_se, axis=2, keepdims=True),
                          axis=0, keepdims=True)[0] / f32(B)                  # (1, 1)

        # `if label[0][1] == 1:` branch of the torch code, expressed as a (1,1) mask.
        qa_mask = (lab[0:1, 1:2] == f32(1.0)).astype(f32)
        total_loss = loss_label + qa_mask * loss_se                           # (1, 1)

        # pack both tiny results into one lane-dense (8,128) slab (single output DMA).
        out_ref[...] = jnp.zeros_like(out_ref)
        out_ref[0:2, 0:2] = prob
        out_ref[2:3, 0:1] = total_loss


def bert_qa_head(clf_target, support_vals, output_qa, params, label,
                 start_1hot, end_1hot):
    wq, bq, wk, bk, wc, bc, sw, ew = params
    bf16 = jnp.bfloat16
    hi = jax.lax.Precision.HIGHEST

    # ---- weight-only precompute (amortized across calls when weights are static) ---
    # A = Wq @ Wk^T  (f32 compute, bf16 for the MXU);  b_eff = bq @ Wk^T.
    a_bf = jnp.dot(wq, wk.T, precision=hi).astype(bf16)                 # (H, H) bf16
    b_eff = jnp.dot(bq, wk.T, precision=hi)                             # (1, H) f32
    wc_bf = wc.astype(bf16)                                             # (H, 2) bf16
    w_se = jnp.concatenate([sw.reshape(H, 1), ew.reshape(H, 1)],
                           axis=1).astype(bf16)                         # (H, 2) bf16
    # bk / bq-only terms drop out of the support-axis softmax (constant per batch row).

    # ---- per-call activation prep ---------------------------------------------------
    clf_bf = clf_target.astype(bf16)                                    # (B, H) bf16
    qa_flat = output_qa.reshape(B * S, H).astype(bf16)                  # (B*S, H) bf16
    t_se = jnp.stack([start_1hot, end_1hot], axis=-1)                   # (B, S, 2) f32

    grid = (H // _TK,)  # 2 steps: pipeline the A-weight DMA against the MXU work.

    in_specs = [
        pl.BlockSpec((B, _TK), lambda k: (0, k)),              # clf_bf   (blocked over K)
        pl.BlockSpec((_TK, H), lambda k: (k, 0)),              # A        (blocked over K)
        pl.BlockSpec((1, H), lambda k: (0, 0)),                # b_eff
        pl.BlockSpec((N_SUPPORT, B, H), lambda k: (0, 0, 0)),  # support values (f32, once)
        pl.BlockSpec((B * S, H), lambda k: (0, 0)),            # qa_flat
        pl.BlockSpec((H, 2), lambda k: (0, 0)),                # wc
        pl.BlockSpec((1, 2), lambda k: (0, 0)),                # bc
        pl.BlockSpec((H, 2), lambda k: (0, 0)),                # w_se
        pl.BlockSpec((B, 2), lambda k: (0, 0)),                # label
        pl.BlockSpec((B, S, 2), lambda k: (0, 0, 0)),          # stacked 1-hot targets
    ]

    slab = pl.pallas_call(
        _bert_qa_head_kernel,
        out_shape=jax.ShapeDtypeStruct((8, 128), jnp.float32),
        grid_spec=pltpu.PrefetchScalarGridSpec(
            num_scalar_prefetch=0,
            grid=grid,
            in_specs=in_specs,
            out_specs=pl.BlockSpec((8, 128), lambda k: (0, 0)),
            scratch_shapes=[pltpu.VMEM((B, H), jnp.float32)]),
        compiler_params=pltpu.CompilerParams(
            dimension_semantics=("arbitrary",)),
    )(clf_bf, a_bf, b_eff, support_vals, qa_flat,
      wc_bf, bc, w_se, label, t_se)

    total_loss = slab[2, 0]
    prob = slab[0:2, 0:2]
    return total_loss, prob


if __name__ == "__main__":
    root = jax.random.PRNGKey(0)
    ks = jax.random.split(root, 16)

    # ---- deterministic parameter init (shapes from Bert_QA.__init__) --------------
    wq = jax.random.uniform(ks[0], (H, H), jnp.float32, -0.05, 0.05)   # target_query
    bq = jax.random.uniform(ks[1], (1, H), jnp.float32, -0.05, 0.05)
    wk = jax.random.uniform(ks[2], (H, H), jnp.float32, -0.05, 0.05)   # support_key
    bk = jax.random.uniform(ks[3], (1, H), jnp.float32, -0.05, 0.05)
    wc = jax.random.uniform(ks[4], (H, 2), jnp.float32, -0.05, 0.05)   # clf_clasifier
    bc = jax.random.uniform(ks[5], (1, 2), jnp.float32, -0.05, 0.05)
    sw = jax.random.uniform(ks[6], (1, H), jnp.float32, -0.8, 0.8)     # start_clasifier
    ew = jax.random.uniform(ks[7], (1, H), jnp.float32, -0.8, 0.8)     # end_clasifier
    params = (wq, bq, wk, bk, wc, bc, sw, ew)

    # ---- synthetic stand-ins for outputs of the (undefined) BERT submodules -------
    clf_target = jax.random.normal(ks[8], (B, H), jnp.float32)               # ModelingCLF(target)
    support_vals = jax.random.normal(ks[9], (N_SUPPORT, B, H), jnp.float32)  # support outputs
    output_qa = jax.random.normal(ks[10], (B, S, H), jnp.float32)            # ModelingQA output

    # label[0][1] == 1 so the QA-loss branch is active (kernel handles both via mask).
    label = jnp.array([[0.0, 1.0], [1.0, 0.0]], dtype=jnp.float32)
    start_pos = jnp.array([3, 5])
    end_pos = jnp.array([5, 7])
    # Faithful to the torch reference: start_1hot[i][start_pos[i] - 1] = 1.
    start_1hot = jax.nn.one_hot(start_pos - 1, S, dtype=jnp.float32)    # (B, S)
    end_1hot = jax.nn.one_hot(end_pos - 1, S, dtype=jnp.float32)        # (B, S)

    total_loss, prob = bert_qa_head(clf_target, support_vals, output_qa,
                                    params, label, start_1hot, end_1hot)
    jax.block_until_ready((total_loss, prob))
    print("KERNEL_OK")
</pallas_src>

<mosaic_0001>
module attributes {stable_mosaic.version = 11 : i64} {
  func.func @_bert_qa_head_kernel(%arg0: i32, %arg1: memref<2x384xbf16, #tpu.memory_space<vmem>>, %arg2: memref<384x768xbf16, #tpu.memory_space<vmem>>, %arg3: memref<1x768xf32, #tpu.memory_space<vmem>>, %arg4: memref<4x2x768xf32, #tpu.memory_space<vmem>>, %arg5: memref<16x768xbf16, #tpu.memory_space<vmem>>, %arg6: memref<768x2xbf16, #tpu.memory_space<vmem>>, %arg7: memref<1x2xf32, #tpu.memory_space<vmem>>, %arg8: memref<768x2xbf16, #tpu.memory_space<vmem>>, %arg9: memref<2x2xf32, #tpu.memory_space<vmem>>, %arg10: memref<2x8x2xf32, #tpu.memory_space<vmem>>, %arg11: memref<8x128xf32, #tpu.memory_space<vmem>>, %arg12: memref<2x768xf32, #tpu.memory_space<vmem>>) attributes {dimension_semantics = [#tpu.dimension_semantics<arbitrary>], iteration_bounds = array<i64: 2>, scalar_prefetch = 0 : i64, scratch_operands = 1 : i64, tpu.core_type = #tpu.core_type<tc>, window_params = [{transform_indices = @transform_0, window_bounds = array<i64: 2, 384>}, {transform_indices = @transform_1, window_bounds = array<i64: 384, 768>}, {pipeline_mode = #tpu.pipeline_mode<synchronous>, transform_indices = @transform_2, window_bounds = array<i64: 1, 768>}, {pipeline_mode = #tpu.pipeline_mode<synchronous>, transform_indices = @transform_3, window_bounds = array<i64: 4, 2, 768>}, {pipeline_mode = #tpu.pipeline_mode<synchronous>, transform_indices = @transform_4, window_bounds = array<i64: 16, 768>}, {pipeline_mode = #tpu.pipeline_mode<synchronous>, transform_indices = @transform_5, window_bounds = array<i64: 768, 2>}, {pipeline_mode = #tpu.pipeline_mode<synchronous>, transform_indices = @transform_6, window_bounds = array<i64: 1, 2>}, {pipeline_mode = #tpu.pipeline_mode<synchronous>, transform_indices = @transform_7, window_bounds = array<i64: 768, 2>}, {pipeline_mode = #tpu.pipeline_mode<synchronous>, transform_indices = @transform_8, window_bounds = array<i64: 2, 2>}, {pipeline_mode = #tpu.pipeline_mode<synchronous>, transform_indices = @transform_9, window_bounds = array<i64: 2, 8, 2>}, {pipeline_mode = #tpu.pipeline_mode<synchronous>, transform_indices = @transform_10, window_bounds = array<i64: 8, 128>}]} {
    %c0_i32 = arith.constant 0 : i32
    %0 = arith.cmpi eq, %arg0, %c0_i32 : i32
    %1 = arith.extui %0 : i1 to i32
    %c0_i32_0 = arith.constant 0 : i32
    %2 = arith.cmpi ne, %1, %c0_i32_0 : i32
    scf.if %2 {
      %cst_9 = arith.constant 0.000000e+00 : f32
      %12 = vector.broadcast %cst_9 : f32 to vector<2x768xf32>
      %c0_10 = arith.constant 0 : index
      %c0_11 = arith.constant 0 : index
      %13 = vector.load %arg12[%c0_10, %c0_11] : memref<2x768xf32, #tpu.memory_space<vmem>>, vector<2x768xf32>
      tpu.vector_store %arg12[%c0_10, %c0_11], %12 {strides = array<i32>} : memref<2x768xf32, #tpu.memory_space<vmem>>, vector<2x768xf32>,
    } else {
    }
    %c0 = arith.constant 0 : index
    %c0_1 = arith.constant 0 : index
    %3 = vector.load %arg12[%c0, %c0_1] : memref<2x768xf32, #tpu.memory_space<vmem>>, vector<2x768xf32>
    %c0_2 = arith.constant 0 : index
    %c0_3 = arith.constant 0 : index
    %4 = vector.load %arg1[%c0_2, %c0_3] : memref<2x384xbf16, #tpu.memory_space<vmem>>, vector<2x384xbf16>
    %c0_4 = arith.constant 0 : index
    %c0_5 = arith.constant 0 : index
    %5 = vector.load %arg2[%c0_4, %c0_5] : memref<384x768xbf16, #tpu.memory_space<vmem>>, vector<384x768xbf16>
    %cst = arith.constant dense<0.000000e+00> : vector<2x768xf32>
    %6 = tpu.matmul %4, %5, %cst {dimension_numbers = #tpu.dot_dimension_numbers<[1], [0], [0], [1], [0, 0, 1, 1], [], []>} : vector<2x384xbf16>, vector<384x768xbf16>, vector<2x768xf32> -> vector<2x768xf32>
    %7 = arith.addf %3, %6 : vector<2x768xf32>
    %c0_6 = arith.constant 0 : index
    %c0_7 = arith.constant 0 : index
    %8 = vector.load %arg12[%c0_6, %c0_7] : memref<2x768xf32, #tpu.memory_space<vmem>>, vector<2x768xf32>
    tpu.vector_store %arg12[%c0_6, %c0_7], %7 {strides = array<i32>} : memref<2x768xf32, #tpu.memory_space<vmem>>, vector<2x768xf32>,
    %c1_i32 = arith.constant 1 : i32
    %9 = arith.cmpi eq, %arg0, %c1_i32 : i32
    %10 = arith.extui %9 : i1 to i32
    %c0_i32_8 = arith.constant 0 : i32
    %11 = arith.cmpi ne, %10, %c0_i32_8 : i32
    scf.if %11 {
      %c0_9 = arith.constant 0 : index
      %c0_10 = arith.constant 0 : index
      %c0_11 = arith.constant 0 : index
      %12 = vector.load %arg4[%c0_9, %c0_10, %c0_11] : memref<4x2x768xf32, #tpu.memory_space<vmem>>, vector<4x2x768xf32>
      %c0_12 = arith.constant 0 : index
      %c0_13 = arith.constant 0 : index
      %13 = vector.load %arg9[%c0_12, %c0_13] : memref<2x2xf32, #tpu.memory_space<vmem>>, vector<2x2xf32>
      %c0_14 = arith.constant 0 : index
      %c0_15 = arith.constant 0 : index
      %14 = vector.load %arg12[%c0_14, %c0_15] : memref<2x768xf32, #tpu.memory_space<vmem>>, vector<2x768xf32>
      %c0_16 = arith.constant 0 : index
      %c0_17 = arith.constant 0 : index
      %15 = vector.load %arg3[%c0_16, %c0_17] : memref<1x768xf32, #tpu.memory_space<vmem>>, vector<1x768xf32>
      %16 = vector.broadcast %15 : vector<1x768xf32> to vector<2x768xf32>
      %17 = arith.addf %14, %16 : vector<2x768xf32>
      %18 = vector.shape_cast %17 : vector<2x768xf32> to vector<1x2x768xf32>
      %19 = vector.broadcast %18 : vector<1x2x768xf32> to vector<4x2x768xf32>
      %20 = arith.mulf %19, %12 : vector<4x2x768xf32>
      %cst_18 = arith.constant dense<0.000000e+00> : vector<4x2xf32>
      %21 = vector.multi_reduction <add>, %20, %cst_18 [2] : vector<4x2x768xf32> to vector<4x2xf32>
      %22 = vector.shape_cast %21 : vector<4x2xf32> to vector<4x2x1xf32>
      %cst_19 = arith.constant 0.0360843912 : f32
      %23 = vector.broadcast %cst_19 : f32 to vector<4x2x1xf32>
      %24 = arith.mulf %22, %23 : vector<4x2x1xf32>
      %cst_20 = arith.constant dense<0xFF800000> : vector<2x1xf32>
      %25 = vector.multi_reduction <maximumf>, %24, %cst_20 [0] : vector<4x2x1xf32> to vector<2x1xf32>
      %26 = vector.shape_cast %25 : vector<2x1xf32> to vector<1x2x1xf32>
      %27 = vector.broadcast %26 : vector<1x2x1xf32> to vector<4x2x1xf32>
      %28 = arith.subf %24, %27 : vector<4x2x1xf32>
      %29 = math.exp %28 : vector<4x2x1xf32>
      %cst_21 = arith.constant dense<0.000000e+00> : vector<2x1xf32>
      %30 = vector.multi_reduction <add>, %29, %cst_21 [0] : vector<4x2x1xf32> to vector<2x1xf32>
      %31 = vector.shape_cast %30 : vector<2x1xf32> to vector<1x2x1xf32>
      %32 = vector.broadcast %31 : vector<1x2x1xf32> to vector<4x2x1xf32>
      %33 = arith.divf %29, %32 : vector<4x2x1xf32>
      %34 = vector.broadcast %33 : vector<4x2x1xf32> to vector<4x2x768xf32>
      %35 = arith.mulf %34, %12 : vector<4x2x768xf32>
      %cst_22 = arith.constant dense<0.000000e+00> : vector<2x768xf32>
      %36 = vector.multi_reduction <add>, %35, %cst_22 [0] : vector<4x2x768xf32> to vector<2x768xf32>
      %37 = arith.truncf %36 : vector<2x768xf32> to vector<2x768xbf16>
      %c0_23 = arith.constant 0 : index
      %c0_24 = arith.constant 0 : index
      %38 = vector.load %arg6[%c0_23, %c0_24] : memref<768x2xbf16, #tpu.memory_space<vmem>>, vector<768x2xbf16>
      %cst_25 = arith.constant dense<0.000000e+00> : vector<2x2xf32>
      %39 = tpu.matmul %37, %38, %cst_25 {dimension_numbers = #tpu.dot_dimension_numbers<[1], [0], [0], [1], [0, 0, 1, 1], [], []>} : vector<2x768xbf16>, vector<768x2xbf16>, vector<2x2xf32> -> vector<2x2xf32>
      %c0_26 = arith.constant 0 : index
      %c0_27 = arith.constant 0 : index
      %40 = vector.load %arg7[%c0_26, %c0_27] : memref<1x2xf32, #tpu.memory_space<vmem>>, vector<1x2xf32>
      %41 = vector.broadcast %40 : vector<1x2xf32> to vector<2x2xf32>
      %42 = arith.addf %39, %41 : vector<2x2xf32>
      %cst_28 = arith.constant dense<0xFF800000> : vector<2xf32>
      %43 = vector.multi_reduction <maximumf>, %42, %cst_28 [1] : vector<2x2xf32> to vector<2xf32>
      %44 = vector.shape_cast %43 : vector<2xf32> to vector<2x1xf32>
      %45 = vector.broadcast %44 : vector<2x1xf32> to vector<2x2xf32>
      %46 = arith.subf %42, %45 : vector<2x2xf32>
      %47 = math.exp %46 : vector<2x2xf32>
      %cst_29 = arith.constant dense<0.000000e+00> : vector<2xf32>
      %48 = vector.multi_reduction <add>, %47, %cst_29 [1] : vector<2x2xf32> to vector<2xf32>
      %49 = vector.shape_cast %48 : vector<2xf32> to vector<2x1xf32>
      %50 = vector.broadcast %49 : vector<2x1xf32> to vector<2x2xf32>
      %51 = arith.divf %47, %50 : vector<2x2xf32>
      %52 = math.log %49 : vector<2x1xf32>
      %53 = arith.addf %52, %44 : vector<2x1xf32>
      %54 = vector.broadcast %53 : vector<2x1xf32> to vector<2x2xf32>
      %55 = arith.subf %42, %54 : vector<2x2xf32>
      %56 = arith.mulf %13, %55 : vector<2x2xf32>
      %cst_30 = arith.constant dense<0.000000e+00> : vector<2xf32>
      %57 = vector.multi_reduction <add>, %56, %cst_30 [1] : vector<2x2xf32> to vector<2xf32>
      %58 = vector.shape_cast %57 : vector<2xf32> to vector<2x1xf32>
      %cst_31 = arith.constant 0.000000e+00 : f32
      %59 = vector.broadcast %cst_31 : f32 to vector<2x1xf32>
      %60 = arith.subf %59, %58 : vector<2x1xf32>
      %cst_32 = arith.constant dense<0.000000e+00> : vector<1xf32>
      %61 = vector.multi_reduction <add>, %60, %cst_32 [0] : vector<2x1xf32> to vector<1xf32>
      %62 = vector.shape_cast %61 : vector<1xf32> to vector<1x1xf32>
      %cst_33 = arith.constant 2.000000e+00 : f32
      %63 = vector.broadcast %cst_33 : f32 to vector<1x1xf32>
      %64 = arith.divf %62, %63 : vector<1x1xf32>
      %c0_34 = arith.constant 0 : index
      %c0_35 = arith.constant 0 : index
      %65 = vector.load %arg5[%c0_34, %c0_35] : memref<16x768xbf16, #tpu.memory_space<vmem>>, vector<16x768xbf16>
      %c0_36 = arith.constant 0 : index
      %c0_37 = arith.constant 0 : index
      %66 = vector.load %arg8[%c0_36, %c0_37] : memref<768x2xbf16, #tpu.memory_space<vmem>>, vector<768x2xbf16>
      %cst_38 = arith.constant dense<0.000000e+00> : vector<16x2xf32>
      %67 = tpu.matmul %65, %66, %cst_38 {dimension_numbers = #tpu.dot_dimension_numbers<[1], [0], [0], [1], [0, 0, 1, 1], [], []>} : vector<16x768xbf16>, vector<768x2xbf16>, vector<16x2xf32> -> vector<16x2xf32>
      %68 = vector.shape_cast %67 : vector<16x2xf32> to vector<2x8x2xf32>
      %cst_39 = arith.constant dense<0xFF800000> : vector<2x2xf32>
      %69 = vector.multi_reduction <maximumf>, %68, %cst_39 [1] : vector<2x8x2xf32> to vector<2x2xf32>
      %70 = vector.shape_cast %69 : vector<2x2xf32> to vector<2x1x2xf32>
      %71 = vector.broadcast %70 : vector<2x1x2xf32> to vector<2x8x2xf32>
      %72 = arith.subf %68, %71 : vector<2x8x2xf32>
      %73 = math.exp %72 : vector<2x8x2xf32>
      %cst_40 = arith.constant dense<0.000000e+00> : vector<2x2xf32>
      %74 = vector.multi_reduction <add>, %73, %cst_40 [1] : vector<2x8x2xf32> to vector<2x2xf32>
      %75 = vector.shape_cast %74 : vector<2x2xf32> to vector<2x1x2xf32>
      %76 = math.log %75 : vector<2x1x2xf32>
      %77 = arith.addf %76, %70 : vector<2x1x2xf32>
      %c0_41 = arith.constant 0 : index
      %c0_42 = arith.constant 0 : index
      %c0_43 = arith.constant 0 : index
      %78 = vector.load %arg10[%c0_41, %c0_42, %c0_43] : memref<2x8x2xf32, #tpu.memory_space<vmem>>, vector<2x8x2xf32>
      %79 = vector.broadcast %77 : vector<2x1x2xf32> to vector<2x8x2xf32>
      %80 = arith.subf %68, %79 : vector<2x8x2xf32>
      %81 = arith.mulf %78, %80 : vector<2x8x2xf32>
      %cst_44 = arith.constant dense<0.000000e+00> : vector<2x2xf32>
      %82 = vector.multi_reduction <add>, %81, %cst_44 [1] : vector<2x8x2xf32> to vector<2x2xf32>
      %83 = vector.shape_cast %82 : vector<2x2xf32> to vector<2x1x2xf32>
      %cst_45 = arith.constant 0.000000e+00 : f32
      %84 = vector.broadcast %cst_45 : f32 to vector<2x1x2xf32>
      %85 = arith.subf %84, %83 : vector<2x1x2xf32>
      %cst_46 = arith.constant dense<0.000000e+00> : vector<2x1xf32>
      %86 = vector.multi_reduction <add>, %85, %cst_46 [2] : vector<2x1x2xf32> to vector<2x1xf32>
      %87 = vector.shape_cast %86 : vector<2x1xf32> to vector<2x1x1xf32>
      %cst_47 = arith.constant dense<0.000000e+00> : vector<1x1xf32>
      %88 = vector.multi_reduction <add>, %87, %cst_47 [0] : vector<2x1x1xf32> to vector<1x1xf32>
      %89 = vector.shape_cast %88 : vector<1x1xf32> to vector<1x1x1xf32>
      %90 = vector.shape_cast %89 : vector<1x1x1xf32> to vector<1x1xf32>
      %cst_48 = arith.constant 2.000000e+00 : f32
      %91 = vector.broadcast %cst_48 : f32 to vector<1x1xf32>
      %92 = arith.divf %90, %91 : vector<1x1xf32>
      %93 = vector.extract_strided_slice %13 {offsets = [0, 1], sizes = [1, 1], strides = [1, 1]} : vector<2x2xf32> to vector<1x1xf32>
      %cst_49 = arith.constant 1.000000e+00 : f32
      %94 = vector.broadcast %cst_49 : f32 to vector<1x1xf32>
      %95 = arith.cmpf oeq, %93, %94 : vector<1x1xf32>
      %96 = arith.extui %95 : vector<1x1xi1> to vector<1x1xi32>
      %97 = arith.sitofp %96 : vector<1x1xi32> to vector<1x1xf32>
      %98 = arith.mulf %97, %92 : vector<1x1xf32>
      %99 = arith.addf %64, %98 : vector<1x1xf32>
      %cst_50 = arith.constant 0.000000e+00 : f32
      %100 = vector.broadcast %cst_50 : f32 to vector<8x128xf32>
      %c0_51 = arith.constant 0 : index
      %c0_52 = arith.constant 0 : index
      %101 = vector.load %arg11[%c0_51, %c0_52] : memref<8x128xf32, #tpu.memory_space<vmem>>, vector<8x128xf32>
      tpu.vector_store %arg11[%c0_51, %c0_52], %100 {strides = array<i32>} : memref<8x128xf32, #tpu.memory_space<vmem>>, vector<8x128xf32>,
      %c0_53 = arith.constant 0 : index
      %c0_54 = arith.constant 0 : index
      %102 = vector.load %arg11[%c0_53, %c0_54] : memref<8x128xf32, #tpu.memory_space<vmem>>, vector<2x2xf32>
      tpu.vector_store %arg11[%c0_53, %c0_54], %51 {strides = array<i32>} : memref<8x128xf32, #tpu.memory_space<vmem>>, vector<2x2xf32>,
      %c2 = arith.constant 2 : index
      %c0_55 = arith.constant 0 : index
      %103 = vector.load %arg11[%c2, %c0_55] : memref<8x128xf32, #tpu.memory_space<vmem>>, vector<1x1xf32>
      tpu.vector_store %arg11[%c2, %c0_55], %99 {strides = array<i32>} : memref<8x128xf32, #tpu.memory_space<vmem>>, vector<1x1xf32>,
    } else {
    }
    return
  }
  func.func @transform_0(%arg0: i32) -> (i32, i32) {
    %c0_i32 = arith.constant 0 : i32
    %c0_i32_0 = arith.constant 0 : i32
    return %c0_i32, %arg0 : i32, i32
  }
  func.func @transform_1(%arg0: i32) -> (i32, i32) {
    %c0_i32 = arith.constant 0 : i32
    %c0_i32_0 = arith.constant 0 : i32
    return %arg0, %c0_i32 : i32, i32
  }
  func.func @transform_2(%arg0: i32) -> (i32, i32) {
    %c0_i32 = arith.constant 0 : i32
    %c0_i32_0 = arith.constant 0 : i32
    %c0_i32_1 = arith.constant 0 : i32
    return %c0_i32, %c0_i32_0 : i32, i32
  }
  func.func @transform_3(%arg0: i32) -> (i32, i32, i32) {
    %c0_i32 = arith.constant 0 : i32
    %c0_i32_0 = arith.constant 0 : i32
    %c0_i32_1 = arith.constant 0 : i32
    %c0_i32_2 = arith.constant 0 : i32
    return %c0_i32, %c0_i32_0, %c0_i32_1 : i32, i32, i32
  }
  func.func @transform_4(%arg0: i32) -> (i32, i32) {
    %c0_i32 = arith.constant 0 : i32
    %c0_i32_0 = arith.constant 0 : i32
    %c0_i32_1 = arith.constant 0 : i32
    return %c0_i32, %c0_i32_0 : i32, i32
  }
  func.func @transform_5(%arg0: i32) -> (i32, i32) {
    %c0_i32 = arith.constant 0 : i32
    %c0_i32_0 = arith.constant 0 : i32
    %c0_i32_1 = arith.constant 0 : i32
    return %c0_i32, %c0_i32_0 : i32, i32
  }
  func.func @transform_6(%arg0: i32) -> (i32, i32) {
    %c0_i32 = arith.constant 0 : i32
    %c0_i32_0 = arith.constant 0 : i32
    %c0_i32_1 = arith.constant 0 : i32
    return %c0_i32, %c0_i32_0 : i32, i32
  }
  func.func @transform_7(%arg0: i32) -> (i32, i32) {
    %c0_i32 = arith.constant 0 : i32
    %c0_i32_0 = arith.constant 0 : i32
    %c0_i32_1 = arith.constant 0 : i32
    return %c0_i32, %c0_i32_0 : i32, i32
  }
  func.func @transform_8(%arg0: i32) -> (i32, i32) {
    %c0_i32 = arith.constant 0 : i32
    %c0_i32_0 = arith.constant 0 : i32
    %c0_i32_1 = arith.constant 0 : i32
    return %c0_i32, %c0_i32_0 : i32, i32
  }
  func.func @transform_9(%arg0: i32) -> (i32, i32, i32) {
    %c0_i32 = arith.constant 0 : i32
    %c0_i32_0 = arith.constant 0 : i32
    %c0_i32_1 = arith.constant 0 : i32
    %c0_i32_2 = arith.constant 0 : i32
    return %c0_i32, %c0_i32_0, %c0_i32_1 : i32, i32, i32
  }
  func.func @transform_10(%arg0: i32) -> (i32, i32) {
    %c0_i32 = arith.constant 0 : i32
    %c0_i32_0 = arith.constant 0 : i32
    %c0_i32_1 = arith.constant 0 : i32
    return %c0_i32, %c0_i32_0 : i32, i32
  }
}

</mosaic_0001>

<bundles_post_ra>
// kernel: tpu_custom_call.1
= control target key start
LH: loop header
LB: loop body
LE: loop exit
PB: predicated region body
PF: predicated region fallthrough
CT: control target
= control target key end

     0   :  { %s5670_s0 = inlined_call_operand.hbm [shape: bf16[2,768], index: 0, kind: input, shape index: {}]   ;;  %s5671_s1 = inlined_call_operand.hbm [shape: bf16[768,768], index: 1, kind: input, shape index: {}]   ;;  %s5672_s2 = inlined_call_operand.hbm [shape: f32[1,768], index: 2, kind: input, shape index: {}]   ;;  %s5673_s3 = inlined_call_operand.hbm [shape: f32[4,2,768], index: 3, kind: input, shape index: {}]   ;;  %s5674_s4 = inlined_call_operand.hbm [shape: bf16[16,768], index: 4, kind: input, shape index: {}]   ;;  %s5675_s5 = inlined_call_operand.vmem [shape: bf16[768,2], index: 5, kind: input, shape index: {}]   ;;  %s5676_s6 = inlined_call_operand.hbm [shape: f32[1,2], index: 6, kind: input, shape index: {}]   ;;  %s5677_s7 = inlined_call_operand.vmem [shape: bf16[768,2], index: 7, kind: input, shape index: {}]   ;;  %s5678_s8 = inlined_call_operand.hbm [shape: f32[2,2], index: 8, kind: input, shape index: {}]   ;;  %s5679_s9 = inlined_call_operand.vmem [shape: f32[2,8,2], index: 9, kind: input, shape index: {}]   ;;  %s5680_s10 = inlined_call_operand.hbm [shape: f32[8,128], index: 10, kind: output, shape index: {}]  }
   0x1   :  { %5685 = sst [smem:[#allocation22_spill]] %s5670_s0 }
   0x2   :  { %5686 = sst [smem:[#allocation23_spill]] %s5672_s2 }
   0x3   :  { %5687 = sst [smem:[#allocation24_spill]] %s5673_s3 }
   0x4   :  { %15 = vsyncpa [#allocation4], 0 }
   0x5   :  { %17 = vsyncpa [#allocation4 + $0x1], 0 }
   0x6   :  { %18 = vsyncpa [#allocation7], 0 }
   0x7   :  { %20 = vsyncpa [#allocation7 + $0x1], 0 }
   0x8   :  { %21 = vsyncpa [#allocation10], 0 }
   0x9   :  { %22 = vsyncpa [#allocation13], 0 }
   0xa   :  { %23 = vsyncpa [#allocation5], 0  ;;  %s4690_s13 = smov 0   ;;  %s4692_s14 = smov 0  }
   0xb   :  { %s4694_s15 = smov 0   ;;  %s4696_s16 = smov 0  }
   0xc LB: > { %s4617_s17 = smov [#allocation8]   ;;  %s4711_s19 = sadd.s32 4294967295, %s4615_s16   ;;  %s4615_s16 = sphi %s4696_s16, %s5710_s16   ;;  %s4611_s15 = sphi %s4694_s15, %s5709_s15   ;;  %s4607_s14 = sphi %s4692_s14, %s5708_s14   ;;  %s4603_s13 = sphi %s4690_s13, %s5707_s13  }
   0xd   : > { %s288_s18 = sshll.u32 %s4617_s17, 4  ;;  %p3455_p0 = scmp.ge.s32.totalorder %s4615_s16, 1  ;;  %s289_s18 = int_to_ptr.vmem [resolvable:$true] %s288_s18 }
   0xe   : > { %p5681_p1 = scmp.eq.s32.totalorder %s4711_s19, 0  ;;  %p275_p2 = scmp.lt.s32.totalorder %s4615_s16, 3 }
   0xf   : > { %s4618_s21 = smov [#allocation9]   ;;  %s4619_s24 = smov [#allocation12]  }
  0x10   : > { %p4717_p4 = pnand %p3455_p0, %p275_p2  ;;  %s298_s22 = sshll.u32 %s4618_s21, 4  ;;  %s4723_s22 = int_to_ptr.vmem [resolvable:$true] %s298_s22 }
  0x11   : > { %s328_s25 = sshll.u32 %s4619_s24, 4  ;;  %s5690_s2 = sld [smem:[#allocation23_spill]]  ;;  %s4731_s25 = int_to_ptr.vmem [resolvable:$true] %s328_s25 }
  0x12   : > { %s5688_s20 = scalar_select %p4717_p4, 1, 0 }
  0x13   : > { %p3901_p5 = pneg %p4717_p4 }
  0x15   : > { %p4727_p6 = pnand %p3901_p5, %p5681_p1 }
  0x17   : > { %s4335_s28 = scalar_lea.hbm %s5690_s2, 96  ;;  %p4741_p8 = pneg %p4727_p6 }
  0x18   : > { %p4336_p7 = scmp.ne.s32.totalorder %s5690_s2, %s4335_s28  ;;  %p4342_p11 = scmp.lt.u32.totalorder %s4335_s28, %s5690_s2 }
  0x1a   : > { %p4338_p9 = pnand %p4741_p8, %p4336_p7 }
  0x1c   : > { %p4339_p10 = pneg %p4338_p9 }
  0x1e   : > { %p4344_p12 = pnand %p4342_p11, %p4339_p10 }
  0x20   : > { %4347 = shalt.err (!%p4344_p12)
}
  0x21   : > { %s4348_s21 = scalar_lea.vmem %s289_s18, 96  ;;  %p4356_p5 = scmp.lt.s32.totalorder %s289_s18, %s289_s18 }
  0x22   : > { %p4349_p13 = scmp.ne.s32.totalorder %s289_s18, %s4348_s21  ;;  %p4357_p3 = scmp.lt.s32.totalorder %s4348_s21, %s4348_s21 }
  0x24   : > { %p4351_p0 = pnand %p4349_p13, %p4741_p8  ;;  %p4358_p1 = por %p4357_p3, %p4356_p5 }
  0x26   : > { %p4352_p2 = pneg %p4351_p0 }
  0x28   : > { %p4359_p4 = pnand %p4358_p1, %p4352_p2 }
  0x2a   : > { %4362 = shalt.err (!%p4359_p4)
}
  0x2b   : > { %3904 = dma.hbm_to_vmem [thread:$0]  (!%p4727_p6), %s5690_s2, 96, %s289_s18, [#allocation7]  }
  0x2c   : > { %s5692_s3 = sld [smem:[#allocation24_spill]] }
  0x32   : > { %s4363_s29 = scalar_lea.hbm %s5692_s3, 768 }
  0x33   : > { %p4364_p7 = scmp.ne.s32.totalorder %s5692_s3, %s4363_s29  ;;  %p4370_p1 = scmp.lt.u32.totalorder %s4363_s29, %s5692_s3 }
  0x35   : > { %p4366_p9 = pnand %p4364_p7, %p4741_p8 }
  0x37   : > { %p4367_p3 = pneg %p4366_p9 }
  0x39   : > { %p4372_p4 = pnand %p4370_p1, %p4367_p3 }
  0x3b   : > { %4375 = shalt.err (!%p4372_p4)
}
  0x3c   : > { %s4376_s18 = scalar_lea.vmem %s4723_s22, 768  ;;  %p4384_p13 = scmp.lt.s32.totalorder %s4723_s22, %s4723_s22 }
  0x3d   : > { %p4377_p10 = scmp.ne.s32.totalorder %s4723_s22, %s4376_s18  ;;  %p4385_p0 = scmp.lt.s32.totalorder %s4376_s18, %s4376_s18 }
  0x3f   : > { %p4379_p11 = pnand %p4377_p10, %p4741_p8  ;;  %p4386_p2 = por %p4385_p0, %p4384_p13 }
  0x41   : > { %p4380_p12 = pneg %p4379_p11 }
  0x43   : > { %p4387_p5 = pnand %p4386_p2, %p4380_p12 }
  0x45   : > { %4390 = shalt.err (!%p4387_p5)
}
  0x46   : > { %s4620_s24 = smov 192   ;;  %s4621_s26 = smov 12  }
  0x47   : > { %3907 = dma.hbm_to_vmem [thread:$0]  (!%p4727_p6), %s5692_s3, 768, %s4723_s22, [#allocation10], %s4620_s24, %s4620_s24, %s4621_s26  }
  0x48   : > { %s4391_s12 = scalar_lea.hbm %s5676_s6, 16 }
  0x49   : > { %p4392_p7 = scmp.ne.s32.totalorder %s5676_s6, %s4391_s12  ;;  %p4398_p1 = scmp.lt.u32.totalorder %s4391_s12, %s5676_s6 }
  0x4b   : > { %p4394_p9 = pnand %p4392_p7, %p4741_p8 }
  0x4d   : > { %p4395_p3 = pneg %p4394_p9 }
  0x4f   : > { %p4400_p4 = pnand %p4398_p1, %p4395_p3 }
  0x51   : > { %4403 = shalt.err (!%p4400_p4)
}
  0x52   : > { %s4404_s22 = scalar_lea.vmem %s4731_s25, 16  ;;  %s4411_s24 = scalar_lea.vmem %s4731_s25, 32 }
  0x53   : > { %p4405_p10 = scmp.ne.s32.totalorder %s4731_s25, %s4404_s22  ;;  %p4412_p13 = scmp.lt.s32.totalorder %s4731_s25, %s4731_s25 }
  0x54   : > { %p4413_p0 = scmp.lt.s32.totalorder %s4411_s24, %s4404_s22 }
  0x55   : > { %p4407_p11 = pnand %p4405_p10, %p4741_p8 }
  0x56   : > { %p4414_p2 = por %p4413_p0, %p4412_p13 }
  0x57   : > { %p4408_p12 = pneg %p4407_p11 }
  0x59   : > { %p4415_p5 = pnand %p4414_p2, %p4408_p12 }
  0x5b   : > { %4418 = shalt.err (!%p4415_p5)
}
  0x5c   : > { %3913 = dma.hbm_to_vmem [thread:$0]  (!%p4727_p6), %s5676_s6, 16, %s4731_s25, [#allocation13]  }
  0x5d   : > { %s4622_s27 = smov [#allocation11]   ;;  %s4419_s12 = scalar_lea.hbm %s5674_s4, 768 }
  0x5e   : > { %s311_s28 = sshll.u32 %s4622_s27, 4  ;;  %p4420_p7 = scmp.ne.s32.totalorder %s5674_s4, %s4419_s12  ;;  %s312_s28 = int_to_ptr.vmem [resolvable:$true] %s311_s28 }
  0x5f   : > { %p4426_p1 = scmp.lt.u32.totalorder %s4419_s12, %s5674_s4 }
  0x60   : > { %p4422_p9 = pnand %p4420_p7, %p4741_p8 }
  0x62   : > { %p4423_p3 = pneg %p4422_p9 }
  0x64   : > { %p4428_p4 = pnand %p4426_p1, %p4423_p3 }
  0x66   : > { %4431 = shalt.err (!%p4428_p4)
}
  0x67   : > { %s4432_s25 = scalar_lea.vmem %s312_s28, 768  ;;  %p4440_p13 = scmp.lt.s32.totalorder %s312_s28, %s312_s28 }
  0x68   : > { %p4433_p10 = scmp.ne.s32.totalorder %s312_s28, %s4432_s25  ;;  %p4441_p0 = scmp.lt.s32.totalorder %s4432_s25, %s4432_s25 }
  0x6a   : > { %p4435_p11 = pnand %p4433_p10, %p4741_p8  ;;  %p4442_p2 = por %p4441_p0, %p4440_p13 }
  0x6c   : > { %p4436_p12 = pneg %p4435_p11 }
  0x6e   : > { %p4443_p5 = pnand %p4442_p2, %p4436_p12 }
  0x70   : > { %4446 = shalt.err (!%p4443_p5)
}
  0x71   : > { %s5683_s24 = smov 384   ;;  %s5684_s2 = smov 24  }
  0x72   : > { %3910 = dma.hbm_to_vmem [thread:$0]  (!%p4727_p6), %s5674_s4, 768, %s312_s28, [#allocation10], %s5683_s24, %s5683_s24, %s5684_s2  }
  0x73   : > { %s4625_s29 = smov [#allocation14]   ;;  %s4447_s21 = scalar_lea.hbm %s5678_s8, 32 }
  0x74   : > { %s342_s30 = sshll.u32 %s4625_s29, 4  ;;  %p4448_p7 = scmp.ne.s32.totalorder %s5678_s8, %s4447_s21  ;;  %s343_s30 = int_to_ptr.vmem [resolvable:$true] %s342_s30 }
  0x75   : > { %p4454_p1 = scmp.lt.u32.totalorder %s4447_s21, %s5678_s8 }
  0x76   : > { %p4450_p9 = pnand %p4448_p7, %p4741_p8 }
  0x78   : > { %p4451_p3 = pneg %p4450_p9 }
  0x7a   : > { %p4456_p4 = pnand %p4454_p1, %p4451_p3 }
  0x7c   : > { %4459 = shalt.err (!%p4456_p4)
}
  0x7d   : > { %s4460_s28 = scalar_lea.vmem %s343_s30, 32  ;;  %p4468_p13 = scmp.lt.s32.totalorder %s343_s30, %s343_s30 }
  0x7e   : > { %p4461_p10 = scmp.ne.s32.totalorder %s343_s30, %s4460_s28  ;;  %p4469_p0 = scmp.lt.s32.totalorder %s4460_s28, %s4460_s28 }
  0x80   : > { %p4463_p11 = pnand %p4461_p10, %p4741_p8  ;;  %p4470_p2 = por %p4469_p0, %p4468_p13 }
  0x82   : > { %p4464_p12 = pneg %p4463_p11 }
  0x84   : > { %p4471_p5 = pnand %p4470_p2, %p4464_p12 }
  0x86   : > { %4474 = shalt.err (!%p4471_p5)
}
  0x87   : > { %3916 = dma.hbm_to_vmem [thread:$0]  (!%p4727_p6), %s5678_s8, 32, %s343_s30, [#allocation13]  }
  0x88   : > { %s4844_s3 = sadd.s32 1, %s4615_s16   ;;  %s36_s11 = sadd.s32 1, %s4611_s15 }
  0x89   : > { %s33_s23 = ssub.s32 %s4615_s16, %s4844_s3  ;;  %p43_p7 = scmp.ne.s32.totalorder %s4611_s15, %s4607_s14 }
  0x8a   : > { %p34_p8 = scmp.eq.s32.totalorder %s33_s23, 0  ;;  %p44_p9 = scmp.eq.s32.totalorder %s4615_s16, 0 }
  0x8b   : > { %p49_p3 = scmp.ne.s32.totalorder %s4607_s14, %s4603_s13  ;;  %p5693_p4 = scmp.eq.s32.totalorder %s4711_s19, 0 }
  0x8c   : > { %s4855_s29 = scalar_select %p34_p8, %s4611_s15, %s36_s11  }
  0x8d   : > { %p45_p1 = por %p44_p9, %p43_p7  ;;  %p4859_p10 = por %p5693_p4, %p49_p3 }
  0x8e   : > { %p3929_p11 = scmp.lt.s32.totalorder %s4615_s16, 2  ;;  %s4865_s17 = sand.u32 1, %s4611_s15  }
  0x8f   : > { %s3868_s30 = smul.u32 3, %s4865_s17  ;;  %s5696_s0 = sld [smem:[#allocation22_spill]] }
  0x90   : > { %s3725_s21 = smul.u32 48, %s4615_s16  ;;  %p4869_p6 = pnand %p3929_p11, %p45_p1 }
  0x91   : > { %s3869_s13 = smul.u32 1152, %s4865_s17  ;;  %s360_s26 = scalar_lea.vmem [#allocation3], %s3868_s30 }
  0x92   : > { %s368_s27 = sshll.u32 %s360_s26, 4  ;;  %s357_s23 = scalar_lea.sflag [#allocation4], %s4865_s17  ;;  %s4879_s27 = int_to_ptr.vmem [resolvable:$true] %s368_s27 }
  0x93   : > { %p4477_p13 = pneg %p4869_p6 }
  0x95   : > { %s4877_s28 = scalar_lea.hbm %s5696_s0, %s3725_s21  ;;  %s4480_s25 = scalar_lea.hbm %s5696_s0, 96 }
  0x96   : > { %s4475_s11 = scalar_lea.hbm %s4877_s28, 48  ;;  %p4481_p5 = scmp.lt.u32.totalorder %s4877_s28, %s5696_s0 }
  0x97   : > { %p4476_p12 = scmp.ne.s32.totalorder %s4877_s28, %s4475_s11  ;;  %p4482_p8 = scmp.lt.u32.totalorder %s4480_s25, %s4475_s11 }
  0x98   : > { %p4484_p9 = scmp.lt.u32.totalorder %s4475_s11, %s4877_s28 }
  0x99   : > { %p4478_p0 = pnand %p4477_p13, %p4476_p12  ;;  %p4483_p7 = por %p4482_p8, %p4481_p5 }
  0x9b   : > { %p4479_p2 = pneg %p4478_p0  ;;  %p4485_p3 = por %p4484_p9, %p4483_p7 }
  0x9d   : > { %p4486_p1 = pnand %p4485_p3, %p4479_p2 }
  0x9f   : > { %4489 = shalt.err (!%p4486_p1)
}
  0xa0   : > { %s4490_s30 = scalar_lea.vmem %s4879_s27, 48  ;;  %s4626_s26 = smov [#allocation3]  }
  0xa1   : > { %p4491_p4 = scmp.ne.s32.totalorder %s4879_s27, %s4490_s30  ;;  %s4495_s22 = sshll.u32 %s4626_s26, 4  ;;  %s4496_s22 = int_to_ptr.vmem [resolvable:$false] %s4495_s22 }
  0xa2   : > { %s4497_s24 = scalar_lea.vmem %s4496_s22, 96  ;;  %p4498_p0 = scmp.lt.s32.totalorder %s4879_s27, %s4496_s22 }
  0xa3   : > { %p4493_p11 = pnand %p4491_p4, %p4477_p13  ;;  %p4499_p5 = scmp.lt.s32.totalorder %s4497_s24, %s4490_s30 }
  0xa5   : > { %p4494_p12 = pneg %p4493_p11  ;;  %p4500_p8 = por %p4499_p5, %p4498_p0 }
  0xa7   : > { %p4501_p7 = pnand %p4500_p8, %p4494_p12 }
  0xa9   : > { %4504 = shalt.err (!%p4501_p7)
}
  0xaa   : > { %3920 = dma.hbm_to_vmem [thread:$0]  (!%p4869_p6), %s4877_s28, 48, %s4879_s27, %s357_s23  }
  0xab   : > { %s375_s2 = sand.u32 1, %s4615_s16   ;;  %s379_s11 = scalar_lea.vmem [#allocation6], %s3869_s13 }
  0xac   : > { %s387_s21 = sshll.u32 %s379_s11, 4  ;;  %s3930_s25 = smul.u32 18432, %s4615_s16  ;;  %s4910_s21 = int_to_ptr.vmem [resolvable:$true] %s387_s21 }
  0xad   : > { %s4918_s24 = scalar_lea.sflag [#allocation7], %s375_s2  ;;  %s4510_s16 = scalar_lea.hbm %s5671_s1, 36864 }
  0xae   : > { %s4916_s22 = scalar_lea.hbm %s5671_s1, %s3930_s25 }
  0xaf   : > { %s4505_s0 = scalar_lea.hbm %s4916_s22, 18432  ;;  %p4511_p1 = scmp.lt.u32.totalorder %s4916_s22, %s5671_s1 }
  0xb0   : > { %p4506_p2 = scmp.ne.s32.totalorder %s4916_s22, %s4505_s0  ;;  %p4512_p4 = scmp.lt.u32.totalorder %s4510_s16, %s4505_s0 }
  0xb1   : > { %p4514_p12 = scmp.lt.u32.totalorder %s4505_s0, %s4916_s22 }
  0xb2   : > { %p4508_p9 = pnand %p4506_p2, %p4477_p13  ;;  %p4513_p11 = por %p4512_p4, %p4511_p1 }
  0xb4   : > { %p4509_p3 = pneg %p4508_p9  ;;  %p4515_p0 = por %p4514_p12, %p4513_p11 }
  0xb6   : > { %p4516_p5 = pnand %p4515_p0, %p4509_p3 }
  0xb8   : > { %4519 = shalt.err (!%p4516_p5)
}
  0xb9   : > { %s4520_s23 = scalar_lea.vmem %s4910_s21, 18432  ;;  %s4627_s2 = smov [#allocation6]  }
  0xba   : > { %p4521_p8 = scmp.ne.s32.totalorder %s4910_s21, %s4520_s23  ;;  %s4525_s11 = sshll.u32 %s4627_s2, 4  ;;  %s4526_s11 = int_to_ptr.vmem [resolvable:$false] %s4525_s11 }
  0xbb   : > { %s4527_s25 = scalar_lea.vmem %s4526_s11, 36864  ;;  %p4528_p9 = scmp.lt.s32.totalorder %s4910_s21, %s4526_s11 }
  0xbc   : > { %p4523_p7 = pnand %p4521_p8, %p4477_p13  ;;  %p4529_p1 = scmp.lt.s32.totalorder %s4527_s25, %s4520_s23 }
  0xbe   : > { %p4524_p2 = pneg %p4523_p7  ;;  %p4530_p4 = por %p4529_p1, %p4528_p9 }
  0xc0   : > { %p4531_p11 = pnand %p4530_p4, %p4524_p2 }
  0xc2   : > { %4534 = shalt.err (!%p4531_p11)
}
  0xc3   : > { %s5697_s0 = smov 24   ;;  %s5698_s30 = smov 384  }
  0xc4   : > { %3923 = dma.hbm_to_vmem [thread:$0]  (!%p4869_p6), %s4916_s22, 18432, %s4910_s21, %s4918_s24, %s5698_s30, %s5698_s30, %s5697_s0  }
  0xc5   : > { %p5699_p13 = scmp.ne.s32.totalorder %s5688_s20, 0 }
  0xc6   : > { %s401_s26 = sand.u32 (!%p5699_p13), 1, %s4607_s14  }
  0xc7   : > { %399 = sbr.rel (%p5699_p13) target bundleno = 1719 (0x6b7), region = 60  ;;  %s402_s13 = scalar_lea.sflag (!%p5699_p13), [#allocation4], %s401_s26 }
  0xc8   : > { %s3871_s17 = smul.u32 (!%p5699_p13), 3, %s401_s26 }
  0xca   : > { %s4950_s16 = scalar_lea.vmem (!%p5699_p13), [#allocation3], %s3871_s17 }
  0xce   : > { %4578 = dma.done.wait (%p4859_p10), %s402_s13, 48  }
  0xcf   : > { %4580 = vsyncadd (%p4859_p10), %s402_s13, 4294967248  ;;  %s410_s18 = sand.u32 1, %s4711_s19   ;;  %s3872_s28 = smul.u32 1152, %s401_s26 }
  0xd0   : > { %s411_s21 = scalar_lea.sflag [#allocation7], %s410_s18 }
  0xd1   : > { %s4957_s22 = scalar_lea.vmem [#allocation6], %s3872_s28 }
  0xd2   : > { %4582 = dma.done.wait (%p4859_p10), %s411_s21, 18432  }
  0xd3   : > { %4584 = vsyncadd (%p4859_p10), %s411_s21, 4294948864  ;;  %p5700_p6 = scmp.eq.s32.totalorder %s4711_s19, 0 }
  0xd5   : > { %4586 = dma.done.wait (%p5700_p6), [#allocation7], 96   ;;  %p5701_p3 = pmov %p5700_p6 }
  0xd7   : > { %4588 = vsyncadd (%p5701_p3), [#allocation7], 4294967200  ;;  %p5702_p12 = pmov %p5701_p3 }
  0xd8   : > { %p5703_p0 = pmov %p5701_p3 }
  0xd9   : > { %4590 = dma.done.wait (%p5702_p12), [#allocation10], 1536  }
  0xda   : > { %4592 = vsyncadd (%p5703_p0), [#allocation10], 4294965760  ;;  %p5704_p5 = pmov %p5703_p0 }
  0xdb   : > { %p5705_p8 = pmov %p5703_p0 }
  0xdc   : > { %4594 = dma.done.wait (%p5704_p5), [#allocation13], 48  }
  0xdd   : > { %4596 = vsyncadd (%p5705_p8), [#allocation13], 4294967248  ;;  %p5706_p10 = scmp.ne.s32.totalorder %s4711_s19, 0 }
  0xde   : > { %v4628_v0 = vmov (!%p5706_p10), 0.0  }
  0xdf   : > { %477 = sbr.rel (%p5706_p10) target bundleno = 230 (0xe6), region = 92  ;;  %478 = vst [vmem:[#allocation2] sm:$0xff] (!%p5706_p10), %v4628_v0  ;;  %479 = vst [vmem:[#allocation2 + $0x8] sm:$0xf] (!%p5706_p10), %v4628_v0 }
  0xe6 PF: > { %v3986_v1 = vld [vmem:[%s4957_s22 + $0x4] ss:$24 sps:$4 sm:$0xff]   ;;  %v4629_v3 = vmov 0   ;;  %v3990_v4 = vld [vmem:[%s4957_s22] ss:$24 sps:$4 sm:$0xff]   ;;  %v639_v24 = vlaneseq  ;;  %p3616_p7 = scmp.ne.s32.totalorder %s4711_s19, 1 }
  0xe7   : > { %v3988_v2 = vld [vmem:[%s4957_s22 + $0x304] ss:$24 sps:$4 sm:$0xff]   ;;  %1447 = vmatprep.mubr.bf16.mxu0 %v4629_v3  ;;  %1374 = vmatprep.subr.bf16.mxu1 %v3986_v1  ;;  %v3991_v5 = vld [vmem:[%s4957_s22 + $0x300] ss:$24 sps:$4 sm:$0xff]   ;;  %v3992_v6 = vld [vmem:[%s4957_s22 + $0x34] ss:$24 sps:$4 sm:$0xff]  }
  0xe8   : > { %1415 = vmatprep.subr.bf16.mxu0 %v3988_v2  ;;  %1375 = vmatpush1.bf16.msra.mxu1 %v3990_v4  ;;  %v3994_v7 = vld [vmem:[%s4957_s22 + $0x334] ss:$24 sps:$4 sm:$0xff]   ;;  %v3996_v8 = vld [vmem:[%s4957_s22 + $0x30] ss:$24 sps:$4 sm:$0xff]   ;;  %v3998_v10 = vld [vmem:[%s4957_s22 + $0x64] ss:$24 sps:$4 sm:$0xff]  }
  0xe9   : > { %1416 = vmatpush1.bf16.msra.mxu0 %v3991_v5  ;;  %1376 = vmatprep.subr.bf16.mxu1 %v3992_v6  ;;  %v3997_v9 = vld [vmem:[%s4957_s22 + $0x330] ss:$24 sps:$4 sm:$0xff]   ;;  %v4000_v11 = vld [vmem:[%s4957_s22 + $0x364] ss:$24 sps:$4 sm:$0xff]   ;;  %v4002_v12 = vld [vmem:[%s4957_s22 + $0x60] ss:$24 sps:$4 sm:$0xff]  }
  0xea   : > { %1417 = vmatprep.subr.bf16.mxu0 %v3994_v7  ;;  %v4003_v13 = vld [vmem:[%s4957_s22 + $0x360] ss:$24 sps:$4 sm:$0xff]   ;;  %v4004_v14 = vld [vmem:[%s4957_s22 + $0x94] ss:$24 sps:$4 sm:$0xff]   ;;  %v4008_v16 = vld [vmem:[%s4957_s22 + $0x90] ss:$24 sps:$4 sm:$0xff]  }
  0xeb   : > { %v4006_v15 = vld [vmem:[%s4957_s22 + $0x394] ss:$24 sps:$4 sm:$0xff]   ;;  %v4009_v17 = vld [vmem:[%s4957_s22 + $0x390] ss:$24 sps:$4 sm:$0xff]   ;;  %v4010_v18 = vld [vmem:[%s4957_s22 + $0xc4] ss:$24 sps:$4 sm:$0xff]  }
  0xec   : > { %1377 = vmatpush1.bf16.msra.mxu1 %v3996_v8  ;;  %v4012_v19 = vld [vmem:[%s4957_s22 + $0x3c4] ss:$24 sps:$4 sm:$0xff]   ;;  %v4014_v20 = vld [vmem:[%s4957_s22 + $0xc0] ss:$24 sps:$4 sm:$0xff]   ;;  %v4630_v22 = vmov 1966171168  }
  0xed   : > { %1418 = vmatpush1.bf16.msra.mxu0 %v3997_v9  ;;  %1378 = vmatprep.subr.bf16.mxu1 %v3998_v10  ;;  %v4015_v21 = vld [vmem:[%s4957_s22 + $0x3c0] ss:$24 sps:$4 sm:$0xff]   ;;  %v637_v23 = vunpack.c.l.s4 %v4630_v22  ;;  %v4016_v25 = vld [vmem:[%s4957_s22 + $0xf4] ss:$24 sps:$4 sm:$0xff]   ;;  %v4020_v27 = vld [vmem:[%s4957_s22 + $0xf0] ss:$24 sps:$4 sm:$0xff]  }
  0xee   : > { %1419 = vmatprep.subr.bf16.mxu0 %v4000_v11  ;;  %v4018_v26 = vld [vmem:[%s4957_s22 + $0x3f4] ss:$24 sps:$4 sm:$0xff]   ;;  %v5001_v29 = vshrl.u32 %v639_v24, 7  ;;  %v4021_v30 = vld [vmem:[%s4957_s22 + $0x3f0] ss:$24 sps:$4 sm:$0xff]   ;;  %vm1867_vm0 = vcmask (!%p3616_p7), 1041408  }
  0xef   : > { %v638_v28 = vunpack.c.0.s8 %v637_v23  ;;  %v4022_v31 = vld [vmem:[%s4957_s22 + $0x124] ss:$24 sps:$4 sm:$0xff]   ;;  %v4026_v33 = vld [vmem:[%s4957_s22 + $0x120] ss:$24 sps:$4 sm:$0xff]   ;;  %v4028_v35 = vld [vmem:[%s4957_s22 + $0x154] ss:$24 sps:$4 sm:$0xff]  }
  0xf0   : > { %1379 = vmatpush1.bf16.msra.mxu1 %v4002_v12  ;;  %v4024_v32 = vld [vmem:[%s4957_s22 + $0x424] ss:$24 sps:$4 sm:$0xff]   ;;  %v4027_v34 = vld [vmem:[%s4957_s22 + $0x420] ss:$24 sps:$4 sm:$0xff]   ;;  %v4030_v38 = vld [vmem:[%s4957_s22 + $0x454] ss:$24 sps:$4 sm:$0xff]  }
  0xf1   : > { %1420 = vmatpush1.bf16.msra.mxu0 %v4003_v13  ;;  %1380 = vmatprep.subr.bf16.mxu1 %v4004_v14  ;;  %v641_v36 = vsub.s32 %v638_v28, %v5001_v29  ;;  %v3471_v37 = vld.sshfl [vmem:[%s4950_s16] sm:$0x13 pattern:$0x75316420]  ;;  %v4032_v40 = vld [vmem:[%s4957_s22 + $0x150] ss:$24 sps:$4 sm:$0xff]  }
  0xf2   : > { %1421 = vmatprep.subr.bf16.mxu0 %v4006_v15  ;;  %v635_v39 = vcombine.high %v3471_v37, %v3471_v37  ;;  %v4033_v43 = vld [vmem:[%s4957_s22 + $0x450] ss:$24 sps:$4 sm:$0xff]   ;;  %v4034_v44 = vld [vmem:[%s4957_s22 + $0x184] ss:$24 sps:$4 sm:$0xff]   ;;  %v4038_v45 = vld [vmem:[%s4957_s22 + $0x14] ss:$24 sps:$4 sm:$0xff]  }
  0xf3   : > { %v5013_v41 = vrot.slane %v3471_v37, %v641_v36  ;;  %v4036_v46 = vld [vmem:[%s4957_s22 + $0x10] ss:$24 sps:$4 sm:$0xff]   ;;  %v4039_v47 = vld [vmem:[%s4957_s22 + $0x180] ss:$24 sps:$4 sm:$0xff]   ;;  %v4040_v49 = vld [vmem:[%s4957_s22 + $0x1b4] ss:$24 sps:$4 sm:$0xff]  }
  0xf4   : > { %1381 = vmatpush1.bf16.msra.mxu1 %v4008_v16  ;;  %v5015_v42 = vrot.slane %v635_v39, %v641_v36  ;;  %v4044_v50 = vld [vmem:[%s4957_s22 + $0x44] ss:$24 sps:$4 sm:$0xff]   ;;  %v4042_v51 = vld [vmem:[%s4957_s22 + $0x40] ss:$24 sps:$4 sm:$0xff]   ;;  %v4045_v52 = vld [vmem:[%s4957_s22 + $0x1b0] ss:$24 sps:$4 sm:$0xff]  }
  0xf5   : > { %1422 = vmatpush1.bf16.msra.mxu0 %v4009_v17  ;;  %1382 = vmatprep.subr.bf16.mxu1 %v4010_v18  ;;  %v5025_v48 = vcombine.high %v5013_v41, %v5013_v41  ;;  %v4046_v53 = vld [vmem:[%s4957_s22 + $0x1e4] ss:$24 sps:$4 sm:$0xff]   ;;  %v4050_v54 = vld [vmem:[%s4957_s22 + $0x74] ss:$24 sps:$4 sm:$0xff]   ;;  %v4048_v55 = vld [vmem:[%s4957_s22 + $0x70] ss:$24 sps:$4 sm:$0xff]  }
  0xf6   : > { %1423 = vmatprep.subr.bf16.mxu0 %v4012_v19  ;;  %1406 = vmatprep.mubr.bf16.mxu1 %v5015_v42  ;;  %v4051_v56 = vld [vmem:[%s4957_s22 + $0x1e0] ss:$24 sps:$4 sm:$0xff]   ;;  %v4052_v57 = vld [vmem:[%s4957_s22 + $0x214] ss:$24 sps:$4 sm:$0xff]   ;;  %v4056_v58 = vld [vmem:[%s4957_s22 + $0xa4] ss:$24 sps:$4 sm:$0xff]  }
  0xf7   : > { %v4054_v59 = vld [vmem:[%s4957_s22 + $0xa0] ss:$24 sps:$4 sm:$0xff]   ;;  %v4057_v60 = vld [vmem:[%s4957_s22 + $0x210] ss:$24 sps:$4 sm:$0xff]   ;;  %v4058_v61 = vld [vmem:[%s4957_s22 + $0x244] ss:$24 sps:$4 sm:$0xff]  }
  0xf8   : > { %1383 = vmatpush1.bf16.msra.mxu1 %v4014_v20  ;;  %v4062_v62 = vld [vmem:[%s4957_s22 + $0xd4] ss:$24 sps:$4 sm:$0xff]   ;;  %v4060_v63 = vld [vmem:[%s4957_s22 + $0xd0] ss:$24 sps:$4 sm:$0xff]   ;;  %v4063_v0 = vld [vmem:[%s4957_s22 + $0x240] ss:$24 sps:$4 sm:$0xff]  }
  0xf9   : > { %1424 = vmatpush1.bf16.msra.mxu0 %v4015_v21  ;;  %1384 = vmatprep.subr.bf16.mxu1 %v4016_v25  ;;  %v4064_v1 = vld [vmem:[%s4957_s22 + $0x274] ss:$24 sps:$4 sm:$0xff]   ;;  %v4068_v2 = vld [vmem:[%s4957_s22 + $0x104] ss:$24 sps:$4 sm:$0xff]   ;;  %v4066_v4 = vld [vmem:[%s4957_s22 + $0x100] ss:$24 sps:$4 sm:$0xff]  }
  0xfa   : > { %1425 = vmatprep.subr.bf16.mxu0 %v4018_v26  ;;  %v4069_v5 = vld [vmem:[%s4957_s22 + $0x270] ss:$24 sps:$4 sm:$0xff]   ;;  %v4070_v6 = vld [vmem:[%s4957_s22 + $0x2a4] ss:$24 sps:$4 sm:$0xff]   ;;  %v4074_v7 = vld [vmem:[%s4957_s22 + $0x134] ss:$24 sps:$4 sm:$0xff]  }
  0xfb   : > { %v4072_v8 = vld [vmem:[%s4957_s22 + $0x130] ss:$24 sps:$4 sm:$0xff]   ;;  %v4075_v9 = vld [vmem:[%s4957_s22 + $0x2a0] ss:$24 sps:$4 sm:$0xff]   ;;  %v4076_v10 = vld [vmem:[%s4957_s22 + $0x2d4] ss:$24 sps:$4 sm:$0xff]  }
  0xfc   : > { %1385 = vmatpush1.bf16.msra.mxu1 %v4020_v27  ;;  %v4080_v11 = vld [vmem:[%s4957_s22 + $0x164] ss:$24 sps:$4 sm:$0xff]   ;;  %v4078_v12 = vld [vmem:[%s4957_s22 + $0x160] ss:$24 sps:$4 sm:$0xff]   ;;  %v4081_v13 = vld [vmem:[%s4957_s22 + $0x2d0] ss:$24 sps:$4 sm:$0xff]  }
  0xfd   : > { %1426 = vmatpush1.bf16.msra.mxu0 %v4021_v30  ;;  %1386 = vmatprep.subr.bf16.mxu1 %v4022_v31  ;;  %v4084_v14 = vld [vmem:[%s4957_s22 + $0xc] ss:$24 sps:$4 sm:$0xff]   ;;  %v4082_v16 = vld [vmem:[%s4957_s22 + $0x8] ss:$24 sps:$4 sm:$0xff]   ;;  %v4090_v18 = vld [vmem:[%s4957_s22 + $0x3c] ss:$24 sps:$4 sm:$0xff]  }
  0xfe   : > { %1427 = vmatprep.subr.bf16.mxu0 %v4024_v32  ;;  %v4087_v15 = vld [vmem:[%s4957_s22 + $0x194] ss:$24 sps:$4 sm:$0xff]   ;;  %v4085_v17 = vld [vmem:[%s4957_s22 + $0x190] ss:$24 sps:$4 sm:$0xff]   ;;  %v4093_v19 = vld [vmem:[%s4957_s22 + $0x1c4] ss:$24 sps:$4 sm:$0xff]  }
  0xff   : > { %v4088_v20 = vld [vmem:[%s4957_s22 + $0x38] ss:$24 sps:$4 sm:$0xff]   ;;  %v4096_v22 = vld [vmem:[%s4957_s22 + $0x6c] ss:$24 sps:$4 sm:$0xff]   ;;  %v4094_v24 = vld [vmem:[%s4957_s22 + $0x68] ss:$24 sps:$4 sm:$0xff]  }
 0x100   : > { %1387 = vmatpush1.bf16.msra.mxu1 %v4026_v33  ;;  %v4091_v21 = vld [vmem:[%s4957_s22 + $0x1c0] ss:$24 sps:$4 sm:$0xff]   ;;  %v4099_v23 = vld [vmem:[%s4957_s22 + $0x1f4] ss:$24 sps:$4 sm:$0xff]   ;;  %v4097_v25 = vld [vmem:[%s4957_s22 + $0x1f0] ss:$24 sps:$4 sm:$0xff]  }
 0x101   : > { %1428 = vmatpush1.bf16.msra.mxu0 %v4027_v34  ;;  %1388 = vmatprep.subr.bf16.mxu1 %v4028_v35  ;;  %v4102_v26 = vld [vmem:[%s4957_s22 + $0x9c] ss:$24 sps:$4 sm:$0xff]   ;;  %v4100_v28 = vld [vmem:[%s4957_s22 + $0x98] ss:$24 sps:$4 sm:$0xff]   ;;  %v4108_v31 = vld [vmem:[%s4957_s22 + $0xcc] ss:$24 sps:$4 sm:$0xff]  }
 0x102   : > { %1429 = vmatprep.subr.bf16.mxu0 %v4030_v38  ;;  %v4105_v27 = vld [vmem:[%s4957_s22 + $0x224] ss:$24 sps:$4 sm:$0xff]   ;;  %v4103_v30 = vld [vmem:[%s4957_s22 + $0x220] ss:$24 sps:$4 sm:$0xff]   ;;  %v4111_v32 = vld [vmem:[%s4957_s22 + $0x254] ss:$24 sps:$4 sm:$0xff]  }
 0x103   : > { %v4106_v33 = vld [vmem:[%s4957_s22 + $0xc8] ss:$24 sps:$4 sm:$0xff]   ;;  %v4114_v35 = vld [vmem:[%s4957_s22 + $0xfc] ss:$24 sps:$4 sm:$0xff]   ;;  %v4112_v37 = vld [vmem:[%s4957_s22 + $0xf8] ss:$24 sps:$4 sm:$0xff]  }
 0x104   : > { %1389 = vmatpush1.bf16.msra.mxu1 %v4032_v40  ;;  %v4109_v34 = vld [vmem:[%s4957_s22 + $0x250] ss:$24 sps:$4 sm:$0xff]   ;;  %v4117_v36 = vld [vmem:[%s4957_s22 + $0x284] ss:$24 sps:$4 sm:$0xff]   ;;  %v4115_v38 = vld [vmem:[%s4957_s22 + $0x280] ss:$24 sps:$4 sm:$0xff]  }
 0x105   : > { %1430 = vmatpush1.bf16.msra.mxu0 %v4033_v43  ;;  %1390 = vmatprep.subr.bf16.mxu1 %v4034_v44  ;;  %v4120_v39 = vld [vmem:[%s4957_s22 + $0x12c] ss:$24 sps:$4 sm:$0xff]   ;;  %v4121_v43 = vld [vmem:[%s4957_s22 + $0x2b0] ss:$24 sps:$4 sm:$0xff]   ;;  %v4126_v44 = vld [vmem:[%s4957_s22 + $0x15c] ss:$24 sps:$4 sm:$0xff]  }
 0x106   : > { %1538 = vmatprep.subr.bf16.mxu0 %v4038_v45  ;;  %v4123_v40 = vld [vmem:[%s4957_s22 + $0x2b4] ss:$24 sps:$4 sm:$0xff]   ;;  %v4129_v45 = vld [vmem:[%s4957_s22 + $0x2e4] ss:$24 sps:$4 sm:$0xff]   ;;  %vm2670_vm1 = vcmask (!%p3616_p7), 9216   ;;  %vm3243_vm2 = vcmask (!%p3616_p7), 15360  }
 0x107   : > { %s4633_s21 = smov (!%p3616_p7), 127   ;;  %vm3325_vm4 = vcmask (!%p3616_p7), 0  }
 0x108   : > { %1448 = vmatmul.mubr.bf16.vlgmr.msra.gmra.mrb[0].mxu0 %v5025_v48  ;;  %1391 = vmatpush1.bf16.msra.mxu1 %v4039_v47  ;;  %v4127_v47 = vld [vmem:[%s4957_s22 + $0x2e0] ss:$24 sps:$4 sm:$0xff]  }
 0x109   : > { %1539 = vmatpush1.bf16.msra.mxu0 %v4036_v46  ;;  %1392 = vmatprep.subr.bf16.mxu1 %v4040_v49  ;;  %v4124_v46 = vld [vmem:[%s4957_s22 + $0x158] ss:$24 sps:$4 sm:$0xff]   ;;  %v4132_v49 = vld [vmem:[%s4957_s22 + $0x18c] ss:$24 sps:$4 sm:$0xff]  }
 0x10a   : > { %1540 = vmatprep.subr.bf16.mxu0 %v4044_v50  ;;  %1570 = vmatprep.mubr.bf16.mxu0 %v5015_v42  ;;  %v4135_v50 = vld [vmem:[%s4957_s22 + $0x314] ss:$24 sps:$4 sm:$0xff]  }
 0x10c   : > { %1393 = vmatpush1.bf16.msra.mxu1 %v4045_v52  ;;  %v4133_v52 = vld [vmem:[%s4957_s22 + $0x310] ss:$24 sps:$4 sm:$0xff]  }
 0x10d   : > { %1541 = vmatpush1.bf16.msra.mxu0 %v4042_v51  ;;  %1394 = vmatprep.subr.bf16.mxu1 %v4046_v53  ;;  %v4130_v51 = vld [vmem:[%s4957_s22 + $0x188] ss:$24 sps:$4 sm:$0xff]   ;;  %v4138_v53 = vld [vmem:[%s4957_s22 + $0x1bc] ss:$24 sps:$4 sm:$0xff]  }
 0x10e   : > { %1542 = vmatprep.subr.bf16.mxu0 %v4050_v54  ;;  %v4141_v54 = vld [vmem:[%s4957_s22 + $0x344] ss:$24 sps:$4 sm:$0xff]  }
 0x110   : > { %1395 = vmatpush1.bf16.msra.mxu1 %v4051_v56  ;;  %v4139_v56 = vld [vmem:[%s4957_s22 + $0x340] ss:$24 sps:$4 sm:$0xff]  }
 0x111   : > { %1543 = vmatpush1.bf16.msra.mxu0 %v4048_v55  ;;  %1396 = vmatprep.subr.bf16.mxu1 %v4052_v57  ;;  %v4136_v55 = vld [vmem:[%s4957_s22 + $0x1b8] ss:$24 sps:$4 sm:$0xff]   ;;  %v4144_v57 = vld [vmem:[%s4957_s22 + $0x1ec] ss:$24 sps:$4 sm:$0xff]  }
 0x112   : > { %1544 = vmatprep.subr.bf16.mxu0 %v4056_v58  ;;  %v4147_v58 = vld [vmem:[%s4957_s22 + $0x374] ss:$24 sps:$4 sm:$0xff]  }
 0x114   : > { %1397 = vmatpush1.bf16.msra.mxu1 %v4057_v60  ;;  %v4145_v60 = vld [vmem:[%s4957_s22 + $0x370] ss:$24 sps:$4 sm:$0xff]  }
 0x115   : > { %1545 = vmatpush1.bf16.msra.mxu0 %v4054_v59  ;;  %1398 = vmatprep.subr.bf16.mxu1 %v4058_v61  ;;  %v4142_v59 = vld [vmem:[%s4957_s22 + $0x1e8] ss:$24 sps:$4 sm:$0xff]   ;;  %v4150_v61 = vld [vmem:[%s4957_s22 + $0x21c] ss:$24 sps:$4 sm:$0xff]  }
 0x116   : > { %1546 = vmatprep.subr.bf16.mxu0 %v4062_v62  ;;  %v4153_v62 = vld [vmem:[%s4957_s22 + $0x3a4] ss:$24 sps:$4 sm:$0xff]  }
 0x118   : > { %1399 = vmatpush1.bf16.msra.mxu1 %v4063_v0  ;;  %v4151_v0 = vld [vmem:[%s4957_s22 + $0x3a0] ss:$24 sps:$4 sm:$0xff]  }
 0x119   : > { %1547 = vmatpush1.bf16.msra.mxu0 %v4060_v63  ;;  %1400 = vmatprep.subr.bf16.mxu1 %v4064_v1  ;;  %v4148_v63 = vld [vmem:[%s4957_s22 + $0x218] ss:$24 sps:$4 sm:$0xff]   ;;  %v4156_v1 = vld [vmem:[%s4957_s22 + $0x24c] ss:$24 sps:$4 sm:$0xff]  }
 0x11a   : > { %1548 = vmatprep.subr.bf16.mxu0 %v4068_v2  ;;  %v4159_v2 = vld [vmem:[%s4957_s22 + $0x3d4] ss:$24 sps:$4 sm:$0xff]  }
 0x11c   : > { %1401 = vmatpush1.bf16.msra.mxu1 %v4069_v5  ;;  %v4157_v5 = vld [vmem:[%s4957_s22 + $0x3d0] ss:$24 sps:$4 sm:$0xff]  }
 0x11d   : > { %1549 = vmatpush1.bf16.msra.mxu0 %v4066_v4  ;;  %1402 = vmatprep.subr.bf16.mxu1 %v4070_v6  ;;  %v4154_v4 = vld [vmem:[%s4957_s22 + $0x248] ss:$24 sps:$4 sm:$0xff]   ;;  %v4162_v6 = vld [vmem:[%s4957_s22 + $0x27c] ss:$24 sps:$4 sm:$0xff]  }
 0x11e   : > { %1550 = vmatprep.subr.bf16.mxu0 %v4074_v7  ;;  %v4165_v7 = vld [vmem:[%s4957_s22 + $0x404] ss:$24 sps:$4 sm:$0xff]  }
 0x120   : > { %1403 = vmatpush1.bf16.msra.mxu1 %v4075_v9  ;;  %v4163_v9 = vld [vmem:[%s4957_s22 + $0x400] ss:$24 sps:$4 sm:$0xff]  }
 0x121   : > { %1551 = vmatpush1.bf16.msra.mxu0 %v4072_v8  ;;  %1404 = vmatprep.subr.bf16.mxu1 %v4076_v10  ;;  %v4160_v8 = vld [vmem:[%s4957_s22 + $0x278] ss:$24 sps:$4 sm:$0xff]   ;;  %v4168_v10 = vld [vmem:[%s4957_s22 + $0x2ac] ss:$24 sps:$4 sm:$0xff]  }
 0x122   : > { %1552 = vmatprep.subr.bf16.mxu0 %v4080_v11  ;;  %v4171_v11 = vld [vmem:[%s4957_s22 + $0x434] ss:$24 sps:$4 sm:$0xff]  }
 0x124   : > { %1405 = vmatpush1.bf16.msra.mxu1 %v4081_v13  ;;  %v4169_v13 = vld [vmem:[%s4957_s22 + $0x430] ss:$24 sps:$4 sm:$0xff]  }
 0x125   : > { %1553 = vmatpush1.bf16.msra.mxu0 %v4078_v12  ;;  %1456 = vmatprep.subr.bf16.mxu1 %v4084_v14  ;;  %v4166_v12 = vld [vmem:[%s4957_s22 + $0x2a8] ss:$24 sps:$4 sm:$0xff]   ;;  %v4174_v14 = vld [vmem:[%s4957_s22 + $0x2dc] ss:$24 sps:$4 sm:$0xff]  }
 0x126   : > { %1554 = vmatprep.subr.bf16.mxu0 %v4087_v15  ;;  %v4177_v15 = vld [vmem:[%s4957_s22 + $0x464] ss:$24 sps:$4 sm:$0xff]  }
 0x127   : > { %1407 = vmatmul.mubr.bf16.vlgmr.msra.gmra.mrb[0].mxu1 %v5013_v41 }
 0x128   : > { %1457 = vmatpush1.bf16.msra.mxu1 %v4082_v16  ;;  %1488 = vmatprep.mubr.bf16.mxu1 %v5015_v42  ;;  %v4118_v42 = vld [vmem:[%s4957_s22 + $0x128] ss:$24 sps:$4 sm:$0xff]   ;;  %v4172_v16 = vld [vmem:[%s4957_s22 + $0x2d8] ss:$24 sps:$4 sm:$0xff]  }
 0x129   : > { %1555 = vmatpush1.bf16.msra.mxu0 %v4085_v17  ;;  %1458 = vmatprep.subr.bf16.mxu1 %v4090_v18  ;;  %v4175_v17 = vld [vmem:[%s4957_s22 + $0x460] ss:$24 sps:$4 sm:$0xff]   ;;  %v4180_v18 = vld [vmem:[%s4957_s22 + $0x30c] ss:$24 sps:$4 sm:$0xff]  }
 0x12a   : > { %1556 = vmatprep.subr.bf16.mxu0 %v4093_v19  ;;  %v4178_v19 = vld [vmem:[%s4957_s22 + $0x308] ss:$24 sps:$4 sm:$0xff]  }
 0x12c   : > { %1459 = vmatpush1.bf16.msra.mxu1 %v4088_v20  ;;  %v4183_v20 = vld [vmem:[%s4957_s22 + $0x33c] ss:$24 sps:$4 sm:$0xff]  }
 0x12d   : > { %1557 = vmatpush1.bf16.msra.mxu0 %v4091_v21  ;;  %1460 = vmatprep.subr.bf16.mxu1 %v4096_v22  ;;  %v4181_v21 = vld [vmem:[%s4957_s22 + $0x338] ss:$24 sps:$4 sm:$0xff]   ;;  %v4186_v22 = vld [vmem:[%s4957_s22 + $0x36c] ss:$24 sps:$4 sm:$0xff]  }
 0x12e   : > { %1558 = vmatprep.subr.bf16.mxu0 %v4099_v23  ;;  %v4184_v23 = vld [vmem:[%s4957_s22 + $0x368] ss:$24 sps:$4 sm:$0xff]  }
 0x130   : > { %1461 = vmatpush1.bf16.msra.mxu1 %v4094_v24  ;;  %v4189_v24 = vld [vmem:[%s4957_s22 + $0x39c] ss:$24 sps:$4 sm:$0xff]  }
 0x131   : > { %1559 = vmatpush1.bf16.msra.mxu0 %v4097_v25  ;;  %1462 = vmatprep.subr.bf16.mxu1 %v4102_v26  ;;  %v4187_v25 = vld [vmem:[%s4957_s22 + $0x398] ss:$24 sps:$4 sm:$0xff]   ;;  %v4190_v26 = vld [vmem:[%s4957_s22 + $0x3c8] ss:$24 sps:$4 sm:$0xff]  }
 0x132   : > { %1560 = vmatprep.subr.bf16.mxu0 %v4105_v27  ;;  %v4195_v27 = vld [vmem:[%s4957_s22 + $0x3fc] ss:$24 sps:$4 sm:$0xff]  }
 0x134   : > { %1463 = vmatpush1.bf16.msra.mxu1 %v4100_v28  ;;  %v4198_v28 = vld [vmem:[%s4957_s22 + $0x42c] ss:$24 sps:$4 sm:$0xff]  }
 0x135   : > { %1561 = vmatpush1.bf16.msra.mxu0 %v4103_v30  ;;  %1464 = vmatprep.subr.bf16.mxu1 %v4108_v31  ;;  %v4196_v30 = vld [vmem:[%s4957_s22 + $0x428] ss:$24 sps:$4 sm:$0xff]   ;;  %v4201_v31 = vld [vmem:[%s4957_s22 + $0x45c] ss:$24 sps:$4 sm:$0xff]  }
 0x136   : > { %1562 = vmatprep.subr.bf16.mxu0 %v4111_v32  ;;  %v4199_v32 = vld [vmem:[%s4957_s22 + $0x458] ss:$24 sps:$4 sm:$0xff]  }
 0x138   : > { %1465 = vmatpush1.bf16.msra.mxu1 %v4106_v33 }
 0x139   : > { %1563 = vmatpush1.bf16.msra.mxu0 %v4109_v34  ;;  %1466 = vmatprep.subr.bf16.mxu1 %v4114_v35 }
 0x13a   : > { %1564 = vmatprep.subr.bf16.mxu0 %v4117_v36 }
 0x13c   : > { %1467 = vmatpush1.bf16.msra.mxu1 %v4112_v37 }
 0x13d   : > { %1565 = vmatpush1.bf16.msra.mxu0 %v4115_v38  ;;  %1468 = vmatprep.subr.bf16.mxu1 %v4120_v39 }
 0x13e   : > { %1566 = vmatprep.subr.bf16.mxu0 %v4123_v40 }
 0x140   : > { %1469 = vmatpush1.bf16.msra.mxu1 %v4118_v42 }
 0x141   : > { %1567 = vmatpush1.bf16.msra.mxu0 %v4121_v43  ;;  %1470 = vmatprep.subr.bf16.mxu1 %v4126_v44 }
 0x142   : > { %1568 = vmatprep.subr.bf16.mxu0 %v4129_v45  ;;  %v4631_v45 = vmov 1983009808  }
 0x144   : > { %1471 = vmatpush1.bf16.msra.mxu1 %v4124_v46  ;;  %v1629_v46 = vunpack.c.l.s4 %v4631_v45 }
 0x145   : > { %1569 = vmatpush1.bf16.msra.mxu0 %v4127_v47  ;;  %1472 = vmatprep.subr.bf16.mxu1 %v4132_v49 }
 0x146   : > { %1579 = vmatprep.subr.bf16.mxu0 %v4135_v50  ;;  %v1630_v47 = vunpack.c.0.s8 %v1629_v46 }
 0x148   : > { %1571 = vmatmul.mubr.bf16.vlgmr.msra.gmra.mrb[4].mxu0 %v5013_v41  ;;  %1473 = vmatpush1.bf16.msra.mxu1 %v4130_v51  ;;  %v5146_v51 = vsub.s32 %v1630_v47, %v5001_v29 }
 0x149   : > { %1580 = vmatpush1.bf16.msra.mxu0 %v4133_v52  ;;  %1474 = vmatprep.subr.bf16.mxu1 %v4138_v53  ;;  %v481_v53 = vld [vmem:[#allocation2 + $0x8] sm:$0xf] }
 0x14a   : > { %1581 = vmatprep.subr.bf16.mxu0 %v4141_v54  ;;  %1611 = vmatprep.mubr.bf16.mxu0 %v4629_v3 }
 0x14c   : > { %1475 = vmatpush1.bf16.msra.mxu1 %v4136_v55 }
 0x14d   : > { %1582 = vmatpush1.bf16.msra.mxu0 %v4139_v56  ;;  %1476 = vmatprep.subr.bf16.mxu1 %v4144_v57 }
 0x14e   : > { %1583 = vmatprep.subr.bf16.mxu0 %v4147_v58 }
 0x150   : > { %1477 = vmatpush1.bf16.msra.mxu1 %v4142_v59 }
 0x151   : > { %1584 = vmatpush1.bf16.msra.mxu0 %v4145_v60  ;;  %1478 = vmatprep.subr.bf16.mxu1 %v4150_v61 }
 0x152   : > { %1585 = vmatprep.subr.bf16.mxu0 %v4153_v62 }
 0x154   : > { %1479 = vmatpush1.bf16.msra.mxu1 %v4148_v63 }
 0x155   : > { %1586 = vmatpush1.bf16.msra.mxu0 %v4151_v0  ;;  %1480 = vmatprep.subr.bf16.mxu1 %v4156_v1  ;;  %v480_v0 = vld [vmem:[#allocation2] sm:$0xff] }
 0x156   : > { %1587 = vmatprep.subr.bf16.mxu0 %v4159_v2 }
 0x158   : > { %1481 = vmatpush1.bf16.msra.mxu1 %v4154_v4  ;;  %v1676_v4 = vsub.s32 (!%p3616_p7), 0, %v5001_v29 }
 0x159   : > { %1588 = vmatpush1.bf16.msra.mxu0 %v4157_v5  ;;  %1482 = vmatprep.subr.bf16.mxu1 %v4162_v6  ;;  %v1680_v5 = vsub.s32 (!%p3616_p7), 1, %v5001_v29  ;;  %v1672_v6 = vld [vmem:[#allocation8] sm:$0x3f] (!%p3616_p7) }
 0x15a   : > { %1589 = vmatprep.subr.bf16.mxu0 %v4165_v7  ;;  %v1684_v7 = vsub.s32 (!%p3616_p7), 2, %v5001_v29 }
 0x15c   : > { %1483 = vmatpush1.bf16.msra.mxu1 %v4160_v8  ;;  %v1688_v8 = vsub.s32 (!%p3616_p7), 3, %v5001_v29 }
 0x15d   : > { %1590 = vmatpush1.bf16.msra.mxu0 %v4163_v9  ;;  %1484 = vmatprep.subr.bf16.mxu1 %v4168_v10  ;;  %v1677_v9 = vrot.slane (!%p3616_p7), %v1672_v6, %v1676_v4  ;;  %v1681_v10 = vrot.slane (!%p3616_p7), %v1672_v6, %v1680_v5 }
 0x15e   : > { %1591 = vmatprep.subr.bf16.mxu0 %v4171_v11  ;;  %v1692_v11 = vsub.s32 (!%p3616_p7), 4, %v5001_v29 }
 0x160   : > { %1485 = vmatpush1.bf16.msra.mxu1 %v4166_v12  ;;  %v1696_v12 = vsub.s32 (!%p3616_p7), 5, %v5001_v29  ;;  %v5166_v29 = vld [vmem:[#allocation9 + $0x14] sm:$0xf] (!%p3616_p7) }
 0x161   : > { %1592 = vmatpush1.bf16.msra.mxu0 %v4169_v13  ;;  %1486 = vmatprep.subr.bf16.mxu1 %v4174_v14  ;;  %v1685_v13 = vrot.slane (!%p3616_p7), %v1672_v6, %v1684_v7  ;;  %v1689_v14 = vrot.slane (!%p3616_p7), %v1672_v6, %v1688_v8 }
 0x162   : > { %1593 = vmatprep.subr.bf16.mxu0 %v4177_v15  ;;  %v1693_v15 = vrot.slane (!%p3616_p7), %v1672_v6, %v1692_v11 }
 0x164   : > { %1487 = vmatpush1.bf16.msra.mxu1 %v4172_v16  ;;  %v1697_v16 = vrot.slane (!%p3616_p7), %v1672_v6, %v1696_v12 }
 0x165   : > { %1594 = vmatpush1.bf16.msra.mxu0 %v4175_v17  ;;  %1497 = vmatprep.subr.bf16.mxu1 %v4180_v18  ;;  %v1698_v17 = vcombine.low (!%p3616_p7), %v1677_v9, %v1681_v10 }
 0x167   : > { %1489 = vmatmul.mubr.bf16.vlgmr.msra.gmra.mrb[4].mxu1 %v5013_v41  ;;  %v4192_v41 = vld [vmem:[%s4957_s22 + $0x3cc] ss:$24 sps:$4 sm:$0xff]  }
 0x168   : > { %1612 = vmatmul.mubr.bf16.vlgmr.msra.gmra.mrb[4].mxu0 %v5025_v48  ;;  %1498 = vmatpush1.bf16.msra.mxu1 %v4178_v19  ;;  %v1699_v19 = vcombine.low (!%p3616_p7), %v1685_v13, %v1689_v14 }
 0x169   : > { %1529 = vmatprep.mubr.bf16.mxu1 %v4629_v3  ;;  %1499 = vmatprep.subr.bf16.mxu1 %v4183_v20  ;;  %v4193_v3 = vld [vmem:[%s4957_s22 + $0x3f8] ss:$24 sps:$4 sm:$0xff]  }
 0x16c   : > { %1500 = vmatpush1.bf16.msra.mxu1 %v4181_v21  ;;  %v1706_v21 = vrot.slane (!%p3616_p7), %v1698_v17, %v5146_v51 }
 0x16d   : > { %1501 = vmatprep.subr.bf16.mxu1 %v4186_v22  ;;  %v1715_v22 = vcombine.low (!%p3616_p7), %v1693_v15, %v1697_v16 }
 0x170   : > { %1502 = vmatpush1.bf16.msra.mxu1 %v4184_v23  ;;  %v5159_v23 = vld [vmem:[#allocation9 + $0x20] sm:$0xf] (!%p3616_p7) }
 0x171   : > { %1503 = vmatprep.subr.bf16.mxu1 %v4189_v24  ;;  %v1713_v24 = vrot.slane (!%p3616_p7), %v1699_v19, %v5146_v51 }
 0x174   : > { %1504 = vmatpush1.bf16.msra.mxu1 %v4187_v25  ;;  %v5162_v25 = vld [vmem:[#allocation9 + $0x8] sm:$0xf] (!%p3616_p7) }
 0x175   : > { %1505 = vmatprep.subr.bf16.mxu1 %v4192_v41  ;;  %v5164_v41 = vld [vmem:[#allocation9 + $0x2c] sm:$0xf] (!%p3616_p7) }
 0x178   : > { %1506 = vmatpush1.bf16.msra.mxu1 %v4190_v26  ;;  %v5168_v26 = vld [vmem:[#allocation9 + $0x18] sm:$0xff] (!%p3616_p7) }
 0x179   : > { %1507 = vmatprep.subr.bf16.mxu1 %v4195_v27  ;;  %v1722_v27 = vrot.slane (!%p3616_p7), %v1715_v22, %v5146_v51 }
 0x17c   : > { %1508 = vmatpush1.bf16.msra.mxu1 %v4193_v3  ;;  %v5171_v3 = vld [vmem:[#allocation9] sm:$0xff] (!%p3616_p7) }
 0x17d   : > { %1509 = vmatprep.subr.bf16.mxu1 %v4198_v28  ;;  %v5173_v28 = vld [vmem:[#allocation9 + $0x24] sm:$0xff] (!%p3616_p7) }
 0x180   : > { %1510 = vmatpush1.bf16.msra.mxu1 %v4196_v30  ;;  %v5175_v30 = vld [vmem:[#allocation9 + $0xc] sm:$0xff] (!%p3616_p7) }
 0x181   : > { %1511 = vmatprep.subr.bf16.mxu1 %v4201_v31  ;;  %v1714_v31 = vcombine.low (!%p3616_p7), %v1706_v21, %v1713_v24 }
 0x184   : > { %1512 = vmatpush1.bf16.msra.mxu1 %v4199_v32 }
 0x187   : > { %1530 = vmatmul.mubr.bf16.vlgmr.msra.gmra.mrb[4].mxu1 %v5025_v48 }
 0x1db   : > { %v1449_v33 = vpop.f32.mrb[0].mxu0 }
 0x1dc   : > { %v1451_v34 = vpop.f32.mrb[1].mxu0 }
 0x1dd   : > { %v1453_v35 = vpop.f32.mrb[2].mxu0 }
 0x1de   : > { %v1454_v36 = vpop.f32.mrb[3].mxu0 }
 0x1fa   : > { %v1408_v37 = vpop.f32.mrb[0].mxu1 }
 0x1fb   : > { %v1450_v38 = vadd.f32 %v1449_v33, %v1408_v37  ;;  %v1410_v39 = vpop.f32.mrb[1].mxu1 }
 0x1fc   : > { %v1452_v40 = vadd.f32 %v1451_v34, %v1410_v39  ;;  %v1412_v42 = vpop.f32.mrb[2].mxu1 }
 0x1fd   : > { %v1413_v43 = vpop.f32.mrb[3].mxu1 }
 0x1fe   : > { %v1626_v44 = vcombine.low %v1450_v38, %v1452_v40 }
 0x200   : > { %v1634_v62 = vrot.slane %v1626_v44, %v5146_v51 }
 0x23b   : > { %v1613_v49 = vpop.f32.mrb[4].mxu0 }
 0x23c   : > { %v1615_v50 = vpop.f32.mrb[5].mxu0 }
 0x23d   : > { %v1643_v48 = vcombine.low %v1613_v49, %v1615_v50  ;;  %v1617_v52 = vpop.f32.mrb[6].mxu0 }
 0x23e   : > { %v1618_v54 = vpop.f32.mrb[7].mxu0 }
 0x23f   : > { %v1650_v55 = vrot.slane %v1643_v48, %v5146_v51 }
 0x241   : > { %v1654_v56 = vadd.f32 %v1650_v55, %v481_v53 }
 0x243   : > { %1656 = vst [vmem:[#allocation2 + $0x8] sm:$0xf] %v1654_v56 }
 0x24a   : > { %v1671_v18 = vld [vmem:[#allocation2 + $0x8] sm:$0xf] (!%p3616_p7) }
 0x24b   : > { %v1726_v32 = vadd.f32 (!%p3616_p7), %v1722_v27, %v1671_v18 }
 0x24d   : > { %v1732_v34 = vmul.f32 (!%p3616_p7), %v1726_v32, %v5159_v23  ;;  %v1728_v35 = vmul.f32 (!%p3616_p7), %v1726_v32, %v5162_v25  ;;  %v1734_v36 = vmul.f32 (!%p3616_p7), %v1726_v32, %v5164_v41  ;;  %v1730_v37 = vmul.f32 (!%p3616_p7), %v1726_v32, %v5166_v29 }
 0x24f   : > { %v1816_v43 = vrot.slane (!%p3616_p7), %v1732_v34, %v5146_v51  ;;  %v1766_v44 = vrot.slane (!%p3616_p7), %v1728_v35, %v5146_v51  ;;  %v1841_v45 = vrot.slane (!%p3616_p7), %v1734_v36, %v5146_v51  ;;  %v1791_v46 = vrot.slane (!%p3616_p7), %v1730_v37, %v5146_v51 }
 0x251   : > { %v1817_v52 = vcombine.high (!%p3616_p7), %v1816_v43, %v1816_v43  ;;  %v1901_v53 = vsel (!%p3616_p7), %vm1867_vm0, %v1816_v43, 0.0  ;;  %v1767_v54 = vcombine.high (!%p3616_p7), %v1766_v44, %v1766_v44  ;;  %v1875_v55 = vsel (!%p3616_p7), %vm1867_vm0, %v1766_v44, 0.0 }
 0x252   : > { %v1842_v15 = vcombine.high (!%p3616_p7), %v1841_v45, %v1841_v45  ;;  %v1914_v16 = vsel (!%p3616_p7), %vm1867_vm0, %v1841_v45, 0.0 }
 0x254   : > { %v1916_v27 = vsel (!%p3616_p7), %vm1867_vm0, %v1842_v15, 0.0  ;;  %v4219_v15 = vld [vmem:[%s5675_s5 + $0x20] sm:$0xff] (!%p3616_p7)  }
 0x25a   : > { %v1531_v57 = vpop.f32.mrb[4].mxu1 }
 0x25b   : > { %v1533_v58 = vpop.f32.mrb[5].mxu1 }
 0x25c   : > { %v1627_v59 = vcombine.low %v1531_v57, %v1533_v58  ;;  %v1535_v60 = vpop.f32.mrb[6].mxu1 }
 0x25d   : > { %v1536_v61 = vpop.f32.mrb[7].mxu1  ;;  %v1903_v60 = vsel (!%p3616_p7), %vm1867_vm0, %v1817_v52, 0.0 }
 0x25e   : > { %v1641_v63 = vrot.slane %v1627_v59, %v5146_v51  ;;  %1660 = sbr.rel (%p3616_p7) target bundleno = 1694 (0x69e), region = 96 }
 0x260   : > { %v1642_v1 = vcombine.low %v1634_v62, %v1641_v63  ;;  %v1877_v63 = vsel (!%p3616_p7), %vm1867_vm0, %v1767_v54, 0.0 }
 0x262   : > { %v1653_v2 = vadd.f32 %v1642_v1, %v480_v0 }
 0x264   : > { %1655 = vst [vmem:[#allocation2] sm:$0xff] %v1653_v2 }
 0x26b   : > { %v1670_v20 = vld [vmem:[#allocation2] sm:$0xff] }
 0x26c   : > { %v1725_v33 = vadd.f32 %v1714_v31, %v1670_v20 }
 0x26e   : > { %v1731_v38 = vmul.f32 %v1725_v33, %v5168_v26  ;;  %v1727_v39 = vmul.f32 %v1725_v33, %v5171_v3  ;;  %v1733_v40 = vmul.f32 %v1725_v33, %v5173_v28  ;;  %v1729_v42 = vmul.f32 %v1725_v33, %v5175_v30 }
 0x270   : > { %v1793_v47 = vcombine.high %v1731_v38, %v1731_v38  ;;  %v1800_v49 = vrot.slane %v1731_v38, %v5146_v51  ;;  %v1743_v50 = vcombine.high %v1727_v39, %v1727_v39  ;;  %v1750_v48 = vrot.slane %v1727_v39, %v5146_v51 }
 0x271   : > { %v1818_v8 = vcombine.high %v1733_v40, %v1733_v40  ;;  %v1825_v12 = vrot.slane %v1733_v40, %v5146_v51  ;;  %v1768_v20 = vcombine.high %v1729_v42, %v1729_v42  ;;  %v1775_v33 = vrot.slane %v1729_v42, %v5146_v51 }
 0x272   : > { %v1807_v56 = vrot.slane %v1793_v47, %v5146_v51  ;;  %v1808_v57 = vcombine.high %v1800_v49, %v1800_v49  ;;  %v1894_v58 = vsel %vm1867_vm0, %v1800_v49, 0.0  ;;  %v1757_v59 = vrot.slane %v1743_v50, %v5146_v51 }
 0x273   : > { %v1758_v61 = vcombine.high %v1750_v48, %v1750_v48  ;;  %v1868_v62 = vsel %vm1867_vm0, %v1750_v48, 0.0  ;;  %v1832_v14 = vrot.slane %v1818_v8, %v5146_v51  ;;  %v1833_v18 = vcombine.high %v1825_v12, %v1825_v12  ;;  %v4212_v8 = vld [vmem:[%s5675_s5 + $0xd0] sm:$0xff]  }
 0x274   : > { %v1809_v0 = vcombine.high %v1807_v56, %v1807_v56  ;;  %v1895_v1 = vsel %vm1867_vm0, %v1808_v57, 0.0  ;;  %v1897_v2 = vsel %vm1867_vm0, %v1807_v56, 0.0  ;;  %v1759_v4 = vcombine.high %v1757_v59, %v1757_v59 }
 0x275   : > { %v1896_v5 = vadd.f32 %v1895_v1, %v1894_v58  ;;  %v1869_v6 = vsel %vm1867_vm0, %v1758_v61, 0.0  ;;  %v1871_v7 = vsel %vm1867_vm0, %v1757_v59, 0.0  ;;  %v1907_v19 = vsel %vm1867_vm0, %v1825_v12, 0.0  ;;  %v4206_v1 = vld [vmem:[%s5675_s5 + $0x48] sm:$0xff]   ;;  %v4216_v12 = vld [vmem:[%s5675_s5 + $0xd8] sm:$0xff]  }
 0x276   : > { %v1899_v9 = vsel %vm1867_vm0, %v1809_v0, 0.0  ;;  %v1870_v10 = vadd.f32 %v1869_v6, %v1868_v62  ;;  %v1873_v11 = vsel %vm1867_vm0, %v1759_v4, 0.0  ;;  %v1834_v22 = vcombine.high %v1832_v14, %v1832_v14  ;;  %v4203_v62 = vld [vmem:[%s5675_s5] sm:$0xff]   ;;  %v4208_v4 = vld [vmem:[%s5675_s5 + $0xc8] sm:$0xff]   ;;  %v4210_v6 = vld [vmem:[%s5675_s5 + $0x50] sm:$0xff]  }
 0x277   : > { %v1898_v13 = vadd.f32 %v1897_v2, %v1896_v5  ;;  %v1910_v24 = vsel %vm1867_vm0, %v1832_v14, 0.0  ;;  %v1908_v32 = vsel %vm1867_vm0, %v1833_v18, 0.0  ;;  %v1782_v34 = vrot.slane %v1768_v20, %v5146_v51  ;;  %v4205_v0 = vld [vmem:[%s5675_s5 + $0x80] sm:$0xff]   ;;  %v4207_v2 = vld [vmem:[%s5675_s5 + $0x8] sm:$0xff]  }
 0x278   : > { %v1872_v17 = vadd.f32 %v1871_v7, %v1870_v10  ;;  %v1909_v36 = vadd.f32 %v1908_v32, %v1907_v19  ;;  %v1912_v37 = vsel %vm1867_vm0, %v1834_v22, 0.0  ;;  %v1792_v38 = vcombine.high %v1791_v46, %v1791_v46  ;;  %v4209_v5 = vld [vmem:[%s5675_s5 + $0x88] sm:$0xff]   ;;  %v4211_v7 = vld [vmem:[%s5675_s5 + $0x10] sm:$0xff]   ;;  %v4214_v10 = vld [vmem:[%s5675_s5 + $0x58] sm:$0xff]  }
 0x279   : > { %v1900_v21 = vadd.f32 %v1899_v9, %v1898_v13  ;;  %v1783_v40 = vcombine.high %v1775_v33, %v1775_v33  ;;  %v1784_v43 = vcombine.high %v1782_v34, %v1782_v34  ;;  %v1881_v44 = vsel %vm1867_vm0, %v1775_v33, 0.0  ;;  %v4213_v9 = vld [vmem:[%s5675_s5 + $0x90] sm:$0xff]   ;;  %v4217_v13 = vld [vmem:[%s5675_s5 + $0x98] sm:$0xff]   ;;  %v4218_v14 = vld [vmem:[%s5675_s5 + $0x60] sm:$0xff]  }
 0x27a   : > { %v1874_v31 = vadd.f32 %v1873_v11, %v1872_v17  ;;  %v1911_v47 = vadd.f32 %v1910_v24, %v1909_v36  ;;  %v1884_v49 = vsel %vm1867_vm0, %v1782_v34, 0.0  ;;  %v1888_v50 = vsel %vm1867_vm0, %v1791_v46, 0.0  ;;  %v4202_v46 = vld [vmem:[%s5675_s5 + $0x40] sm:$0xff]   ;;  %v4215_v11 = vld [vmem:[%s5675_s5 + $0x18] sm:$0xff]   ;;  %v4222_v18 = vld [vmem:[%s5675_s5 + $0x68] sm:$0xff]  }
 0x27b   : > { %v1902_v35 = vadd.f32 %v1901_v53, %v1900_v21  ;;  %v1882_v42 = vsel %vm1867_vm0, %v1783_v40, 0.0  ;;  %v1886_v52 = vsel %vm1867_vm0, %v1784_v43, 0.0  ;;  %v1890_v53 = vsel %vm1867_vm0, %v1792_v38, 0.0  ;;  %3726 = vmatprep.subr.bf16.mxu0 %v4202_v46  ;;  %v4221_v17 = vld [vmem:[%s5675_s5 + $0xa0] sm:$0xff]   ;;  %v4223_v19 = vld [vmem:[%s5675_s5 + $0x28] sm:$0xff]   ;;  %v4226_v22 = vld [vmem:[%s5675_s5 + $0x70] sm:$0xff]  }
 0x27c   : > { %v1876_v39 = vadd.f32 %v1875_v55, %v1874_v31  ;;  %v1913_v54 = vadd.f32 %v1912_v37, %v1911_v47  ;;  %v1883_v55 = vadd.f32 %v1882_v42, %v1881_v44  ;;  %3727 = vmatpush3.bf16.msra.mxu0 %v4203_v62  ;;  %v4224_v20 = vld [vmem:[%s5675_s5 + $0xe8] sm:$0xff]   ;;  %v4228_v24 = vld [vmem:[%s5675_s5 + $0xf0] sm:$0xff]   ;;  %v4230_v32 = vld [vmem:[%s5675_s5 + $0x78] sm:$0xff]  }
 0x27d   : > { %v1904_v45 = vadd.f32 %v1903_v60, %v1902_v35  ;;  %3728 = vmatprep.subr.bf16.mxu0 %v4206_v1  ;;  %v4225_v21 = vld [vmem:[%s5675_s5 + $0xa8] sm:$0xff]   ;;  %v4229_v31 = vld [vmem:[%s5675_s5 + $0xb0] sm:$0xff]   ;;  %v4232_v33 = vld [vmem:[%s5675_s5 + $0xf8] sm:$0xff]  }
 0x27e   : > { %v1878_v48 = vadd.f32 %v1877_v63, %v1876_v39  ;;  %v1915_v56 = vadd.f32 %v1914_v16, %v1913_v54  ;;  %v1885_v57 = vadd.f32 %v1884_v49, %v1883_v55  ;;  %v4204_v63 = vld [vmem:[%s5675_s5 + $0xc0] sm:$0xff]   ;;  %v4231_v34 = vld [vmem:[%s5675_s5 + $0x38] sm:$0xff]  }
 0x27f   : > { %1905 = vadd.xlane.f32.xlu1 %v1904_v45  ;;  %3748 = vmatprep.subr.bf16.mxu1 %v4204_v63  ;;  %v4220_v16 = vld [vmem:[%s5675_s5 + $0xe0] sm:$0xff]   ;;  %v4233_v35 = vld [vmem:[%s5675_s5 + $0xb8] sm:$0xff]  }
 0x280   : > { %1879 = vadd.xlane.f32.xlu0 %v1878_v48  ;;  %v1917_v58 = vadd.f32 %v1916_v27, %v1915_v56  ;;  %v1887_v59 = vadd.f32 %v1886_v52, %v1885_v57  ;;  %3749 = vmatpush3.bf16.msra.mxu1 %v4205_v0  ;;  %v4227_v27 = vld [vmem:[%s5675_s5 + $0x30] sm:$0xff]   ;;  %v4238_v36 = vld [vmem:[%s5675_s5 + $0x140] sm:$0xff]  }
 0x281   : > { %3729 = vmatpush3.bf16.msra.mxu0 %v4207_v2  ;;  %3750 = vmatprep.subr.bf16.mxu1 %v4208_v4  ;;  %v4254_v37 = vld [vmem:[%s5677_s7 + $0x40] sm:$0xff]  }
 0x282   : > { %v1889_v60 = vadd.f32 %v1888_v50, %v1887_v59  ;;  %3730 = vmatprep.subr.bf16.mxu0 %v4210_v6 }
 0x283   : > { %1918 = vadd.xlane.f32.xlu1 %v1917_v58 }
 0x284   : > { %v1891_v61 = vadd.f32 %v1890_v53, %v1889_v60  ;;  %3751 = vmatpush3.bf16.msra.mxu1 %v4209_v5 }
 0x285   : > { %3731 = vmatpush3.bf16.msra.mxu0 %v4211_v7  ;;  %3752 = vmatprep.subr.bf16.mxu1 %v4212_v8 }
 0x286   : > { %1892 = vadd.xlane.f32.xlu0 %v1891_v61  ;;  %3732 = vmatprep.subr.bf16.mxu0 %v4214_v10 }
 0x288   : > { %3753 = vmatpush3.bf16.msra.mxu1 %v4213_v9 }
 0x289   : > { %3733 = vmatpush3.bf16.msra.mxu0 %v4215_v11  ;;  %3754 = vmatprep.subr.bf16.mxu1 %v4216_v12  ;;  %v1963_v11 = vcombine.high %v5171_v3, %v5171_v3  ;;  %v1988_v12 = vcombine.high %v5175_v30, %v5175_v30 }
 0x28a   : > { %3734 = vmatprep.subr.bf16.mxu0 %v4218_v14  ;;  %v2038_v14 = vcombine.high %v5173_v28, %v5173_v28 }
 0x28c   : > { %3755 = vmatpush3.bf16.msra.mxu1 %v4217_v13  ;;  %v2013_v13 = vcombine.high %v5168_v26, %v5168_v26 }
 0x28d   : > { %3735 = vmatpush3.bf16.msra.mxu0 %v4219_v15  ;;  %3756 = vmatprep.subr.bf16.mxu1 %v4220_v16  ;;  %v1970_v15 = vrot.slane %v5171_v3, %v5146_v51  ;;  %v1995_v16 = vrot.slane %v5175_v30, %v5146_v51  ;;  %v5353_v3 = vrot.slane %v5159_v23, %v5146_v51 }
 0x28e   : > { %3736 = vmatprep.subr.bf16.mxu0 %v4222_v18  ;;  %v2045_v18 = vrot.slane %v5173_v28, %v5146_v51  ;;  %v5357_v30 = vrot.slane %v5162_v25, %v5146_v51  ;;  %v5365_v28 = vrot.slane %v5166_v29, %v5146_v51 }
 0x290   : > { %3757 = vmatpush3.bf16.msra.mxu1 %v4221_v17  ;;  %v2020_v17 = vrot.slane %v5168_v26, %v5146_v51  ;;  %v5361_v26 = vrot.slane %v5164_v41, %v5146_v51  ;;  %v2037_v41 = vcombine.high %v5353_v3, %v5353_v3  ;;  %v2012_v29 = vcombine.high %v5365_v28, %v5365_v28 }
 0x291   : > { %3758 = vmatprep.subr.bf16.mxu1 %v4224_v20  ;;  %3737 = vmatpush3.bf16.msra.mxu0 %v4223_v19  ;;  %v1977_v19 = vrot.slane %v1963_v11, %v5146_v51  ;;  %v2002_v20 = vrot.slane %v1988_v12, %v5146_v51 }
 0x292   : > { %3738 = vmatprep.subr.bf16.mxu0 %v4226_v22  ;;  %v2052_v22 = vrot.slane %v2038_v14, %v5146_v51 }
 0x293   : > { %v2004_v23 = vcombine.high %v2002_v20, %v2002_v20 }
 0x294   : > { %3759 = vmatpush3.bf16.msra.mxu1 %v4225_v21  ;;  %v2027_v21 = vrot.slane %v2013_v13, %v5146_v51  ;;  %v1987_v51 = vcombine.high %v5357_v30, %v5357_v30 }
 0x295   : > { %3760 = vmatprep.subr.bf16.mxu1 %v4228_v24  ;;  %3739 = vmatpush3.bf16.msra.mxu0 %v4227_v27  ;;  %v1978_v24 = vcombine.high %v1970_v15, %v1970_v15  ;;  %v2003_v27 = vcombine.high %v1995_v16, %v1995_v16 }
 0x296   : > { %3740 = vmatprep.subr.bf16.mxu0 %v4230_v32  ;;  %v2053_v32 = vcombine.high %v2045_v18, %v2045_v18 }
 0x298   : > { %3761 = vmatpush3.bf16.msra.mxu1 %v4229_v31  ;;  %v2028_v31 = vcombine.high %v2020_v17, %v2020_v17 }
 0x299   : > { %3762 = vmatprep.subr.bf16.mxu1 %v4232_v33  ;;  %3741 = vmatpush3.bf16.msra.mxu0 %v4231_v34  ;;  %v1979_v34 = vcombine.high %v1977_v19, %v1977_v19 }
 0x29a   : > { %3770 = vmatprep.subr.bf16.mxu0 %v4238_v36  ;;  %v2054_v36 = vcombine.high %v2052_v22, %v2052_v22 }
 0x29c   : > { %3763 = vmatpush3.bf16.msra.mxu1 %v4233_v35  ;;  %v2029_v35 = vcombine.high %v2027_v21, %v2027_v21 }
 0x29d   : > { %3792 = vmatprep.subr.bf16.mxu1 %v4254_v37 }
 0x30c   : > { %v1906_v38 = vpop.xlane.xlu1 %1905 }
 0x30d   : > { %v1880_v39 = vpop.xlane.xlu0 %1879  ;;  %v1922_v43 = vmul.f32 0.03608439, %v1906_v38 }
 0x30e   : > { %v1920_v45 = vmul.f32 0.03608439, %v1880_v39 }
 0x30f   : > { %v1926_v50 = vsel %vm1867_vm0, %v1922_v43, -inf }
 0x310   : > { %v1919_v40 = vpop.xlane.xlu1 %1918  ;;  %v1924_v52 = vsel %vm1867_vm0, %v1920_v45, -inf }
 0x311   : > { %v1923_v44 = vmul.f32 0.03608439, %v1919_v40 }
 0x313   : > { %v1927_v47 = vsel %vm1867_vm0, %v1923_v44, -inf  ;;  %v1893_v49 = vpop.xlane.xlu0 %1892 }
 0x314   : > { %v1921_v48 = vmul.f32 0.03608439, %v1893_v49  ;;  %v1929_v42 = vmax.f32 %v1926_v50, %v1927_v47 }
 0x316   : > { %v1925_v53 = vsel %vm1867_vm0, %v1921_v48, -inf }
 0x317   : > { %v1928_v54 = vmax.f32 %v1924_v52, %v1925_v53 }
 0x319   : > { %v1930_v55 = vmax.f32 %v1928_v54, %v1929_v42 }
 0x31b   : > { %v1931_v56 = vsub.f32 %v1920_v45, %v1930_v55  ;;  %v1932_v57 = vsub.f32 %v1921_v48, %v1930_v55  ;;  %v1933_v58 = vsub.f32 %v1922_v43, %v1930_v55  ;;  %v1934_v59 = vsub.f32 %v1923_v44, %v1930_v55 }
 0x31c   : > { %v2062_v48 = vcombine.high %v5361_v26, %v5361_v26 }
 0x31d   : > { %v1935_v60 = vmul.f32 1.442695, %v1931_v56  ;;  %v1937_v61 = vmul.f32 1.442695, %v1932_v57  ;;  %v1939_v46 = vmul.f32 1.442695, %v1933_v58 }
 0x31e   : > { %v1941_v62 = vmul.f32 1.442695, %v1934_v59 }
 0x31f   : > { %4311 = vpow2.f32 %v1935_v60 }
 0x320   : > { %4313 = vpow2.f32 %v1937_v61 }
 0x321   : > { %4315 = vpow2.f32 %v1939_v46 }
 0x322   : > { %4317 = vpow2.f32 %v1941_v62 }
 0x329   : > { %v4312_v63 = vpop.eup %4311 }
 0x32a   : > { %v4314_v0 = vpop.eup %4313  ;;  %v1943_v1 = vsel %vm1867_vm0, %v4312_v63, 0.0 }
 0x32b   : > { %v4316_v2 = vpop.eup %4315  ;;  %v1944_v4 = vsel %vm1867_vm0, %v4314_v0, 0.0 }
 0x32c   : > { %v4318_v5 = vpop.eup %4317  ;;  %v1945_v6 = vadd.f32 %v1944_v4, %v1943_v1  ;;  %v1946_v7 = vsel %vm1867_vm0, %v4316_v2, 0.0 }
 0x32d   : > { %v1948_v9 = vsel %vm1867_vm0, %v4318_v5, 0.0 }
 0x32e   : > { %v1947_v8 = vadd.f32 %v1946_v7, %v1945_v6 }
 0x330   : > { %v1949_v10 = vadd.f32 %v1948_v9, %v1947_v8 }
 0x332   : > { %4319 = vrcp.f32 %v1949_v10 }
 0x33c   : > { %v4320_v33 = vpop.eup %4319 }
 0x33d   : > { %v1952_v37 = vmul.f32 %v4320_v33, %v4314_v0  ;;  %v1951_v25 = vmul.f32 %v4320_v33, %v4312_v63  ;;  %v5367_v38 = vmul.f32 %v4320_v33, %v4316_v2  ;;  %v5369_v39 = vmul.f32 %v4320_v33, %v4318_v5  ;;  %v4239_v33 = vld [vmem:[%s5675_s5 + $0x100] sm:$0xff]  }
 0x33f   : > { %v2088_v40 = vmul.f32 %v1978_v24, %v1951_v25  ;;  %v2094_v43 = vmul.f32 %v2003_v27, %v1952_v37  ;;  %v2100_v44 = vmul.f32 %v2028_v31, %v5367_v38  ;;  %v2106_v45 = vmul.f32 %v2053_v32, %v5369_v39 }
 0x340   : > { %v2090_v47 = vmul.f32 %v1979_v34, %v1951_v25  ;;  %v2096_v49 = vmul.f32 %v2004_v23, %v1952_v37  ;;  %v2102_v50 = vmul.f32 %v2029_v35, %v5367_v38  ;;  %v2108_v54 = vmul.f32 %v2054_v36, %v5369_v39 }
 0x341   : > { %v2118_v42 = vsel %vm1867_vm0, %v2088_v40, 0.0  ;;  %v2119_v52 = vsel %vm1867_vm0, %v2094_v43, 0.0  ;;  %v2121_v53 = vsel %vm1867_vm0, %v2100_v44, 0.0  ;;  %v2123_v56 = vsel %vm1867_vm0, %v2106_v45, 0.0 }
 0x342   : > { %v2120_v55 = vadd.f32 %v2119_v52, %v2118_v42  ;;  %v2132_v57 = vsel %vm1867_vm0, %v2090_v47, 0.0  ;;  %v2133_v58 = vsel %vm1867_vm0, %v2096_v49, 0.0  ;;  %v2135_v60 = vsel %vm1867_vm0, %v2102_v50, 0.0  ;;  %v4255_v47 = vld [vmem:[%s5677_s7] sm:$0xff]   ;;  %v4242_v42 = vld [vmem:[%s5675_s5 + $0x150] sm:$0xff]  }
 0x343   : > { %v2134_v59 = vadd.f32 %v2133_v58, %v2132_v57  ;;  %v2087_v61 = vmul.f32 %v1970_v15, %v1951_v25  ;;  %v2093_v46 = vmul.f32 %v1995_v16, %v1952_v37  ;;  %v2099_v63 = vmul.f32 %v2020_v17, %v5367_v38  ;;  %v4274_v49 = vld [vmem:[#allocation11 + $0x4] ss:$24 sps:$4 sm:$0xff]   ;;  %v4243_v58 = vld [vmem:[%s5675_s5 + $0x110] sm:$0xff]  }
 0x344   : > { %v2122_v62 = vadd.f32 %v2121_v53, %v2120_v55  ;;  %v2105_v0 = vmul.f32 %v2045_v18, %v5369_v39  ;;  %v2089_v1 = vmul.f32 %v1977_v19, %v1951_v25  ;;  %v2095_v6 = vmul.f32 %v2002_v20, %v1952_v37 }
 0x345   : > { %v2136_v2 = vadd.f32 %v2135_v60, %v2134_v59  ;;  %v2111_v4 = vsel %vm1867_vm0, %v2087_v61, 0.0  ;;  %v2112_v5 = vsel %vm1867_vm0, %v2093_v46, 0.0  ;;  %v2137_v8 = vsel %vm1867_vm0, %v2108_v54, 0.0  ;;  %v4258_v60 = vld [vmem:[%s5677_s7 + $0x50] sm:$0xff]   ;;  %v4244_v61 = vld [vmem:[%s5675_s5 + $0x158] sm:$0xff]  }
 0x346   : > { %v2124_v7 = vadd.f32 %v2123_v56, %v2122_v62  ;;  %v2113_v9 = vadd.f32 %v2112_v5, %v2111_v4  ;;  %v2114_v10 = vsel %vm1867_vm0, %v2099_v63, 0.0  ;;  %v2101_v12 = vmul.f32 %v2027_v21, %v5367_v38  ;;  %v4257_v56 = vld [vmem:[%s5677_s7 + $0x8] sm:$0xff]   ;;  %v4259_v46 = vld [vmem:[%s5677_s7 + $0x10] sm:$0xff]   ;;  %v4245_v62 = vld [vmem:[%s5675_s5 + $0x118] sm:$0xff]  }
 0x347   : > { %v2138_v11 = vadd.f32 %v2137_v8, %v2136_v2  ;;  %v2107_v13 = vmul.f32 %v2052_v22, %v5369_v39  ;;  %v2125_v14 = vsel %vm1867_vm0, %v2089_v1, 0.0  ;;  %v2126_v17 = vsel %vm1867_vm0, %v2095_v6, 0.0  ;;  %v4260_v63 = vld [vmem:[%s5677_s7 + $0x58] sm:$0xff]   ;;  %v4247_v2 = vld [vmem:[%s5675_s5 + $0x120] sm:$0xff]   ;;  %v4248_v5 = vld [vmem:[%s5675_s5 + $0x168] sm:$0xff]  }
 0x348   : > { %v2154_v15 = vpack.c.bf16 %v2124_v7, %v2124_v7  ;;  %v2115_v16 = vadd.f32 %v2114_v10, %v2113_v9  ;;  %v2092_v18 = vmul.f32 %v1987_v51, %v1951_v25  ;;  %v2116_v20 = vsel %vm1867_vm0, %v2105_v0, 0.0  ;;  %v4246_v0 = vld [vmem:[%s5675_s5 + $0x160] sm:$0xff]   ;;  %v4261_v1 = vld [vmem:[%s5677_s7 + $0x18] sm:$0xff]   ;;  %v4249_v7 = vld [vmem:[%s5675_s5 + $0x128] sm:$0xff]  }
 0x349   : > { %v2156_v19 = vpack.c.bf16 %v2138_v11, %v2138_v11  ;;  %v2127_v24 = vadd.f32 %v2126_v17, %v2125_v14  ;;  %v2128_v31 = vsel %vm1867_vm0, %v2101_v12, 0.0  ;;  %v2098_v32 = vmul.f32 %v2012_v29, %v1952_v37  ;;  %v4262_v4 = vld [vmem:[%s5677_s7 + $0x60] sm:$0xff]   ;;  %v4264_v8 = vld [vmem:[%s5677_s7 + $0x68] sm:$0xff]   ;;  %v4250_v9 = vld [vmem:[%s5675_s5 + $0x170] sm:$0xff]  }
 0x34a   : > { %2582 = vmatprep.mubr.bf16.mxu0 %v2154_v15  ;;  %v2117_v27 = vadd.f32 %v2116_v20, %v2115_v16  ;;  %v2104_v21 = vmul.f32 %v2037_v41, %v5367_v38  ;;  %v2146_v34 = vsel %vm1867_vm0, %v2092_v18, 0.0  ;;  %v2091_v23 = vmul.f32 %v5357_v30, %v1951_v25  ;;  %v4240_v41 = vld [vmem:[%s5675_s5 + $0x148] sm:$0xff]   ;;  %v4263_v6 = vld [vmem:[%s5677_s7 + $0x20] sm:$0xff]   ;;  %v4251_v11 = vld [vmem:[%s5675_s5 + $0x130] sm:$0xff]  }
 0x34b   : > { %2622 = vmatprep.mubr.bf16.mxu1 %v2156_v19  ;;  %v2129_v22 = vadd.f32 %v2128_v31, %v2127_v24  ;;  %v2097_v35 = vmul.f32 %v5365_v28, %v1952_v37  ;;  %v2130_v51 = vsel %vm1867_vm0, %v2107_v13, 0.0  ;;  %v2110_v40 = vmul.f32 %v2062_v48, %v5369_v39  ;;  %v4265_v10 = vld [vmem:[%s5677_s7 + $0x28] sm:$0xff]   ;;  %v4266_v12 = vld [vmem:[%s5677_s7 + $0x70] sm:$0xff]   ;;  %v4252_v13 = vld [vmem:[%s5675_s5 + $0x178] sm:$0xff]  }
 0x34c   : > { %v2153_v36 = vpack.c.bf16 %v2117_v27, %v2117_v27  ;;  %v2147_v29 = vsel %vm1867_vm0, %v2098_v32, 0.0  ;;  %v2103_v45 = vmul.f32 %v5353_v3, %v5367_v38  ;;  %v2149_v30 = vsel %vm1867_vm0, %v2104_v21, 0.0  ;;  %v4241_v3 = vld [vmem:[%s5675_s5 + $0x108] sm:$0xff]   ;;  %v4267_v14 = vld [vmem:[%s5677_s7 + $0x30] sm:$0xff]   ;;  %v4253_v15 = vld [vmem:[%s5675_s5 + $0x138] sm:$0xff]  }
 0x34d   : > { %v2131_v43 = vadd.f32 %v2130_v51, %v2129_v22  ;;  %v2148_v44 = vadd.f32 %v2147_v29, %v2146_v34  ;;  %v2109_v28 = vmul.f32 %v5361_v26, %v5369_v39  ;;  %v2139_v37 = vsel %vm1867_vm0, %v2091_v23, 0.0  ;;  %v4256_v26 = vld [vmem:[%s5677_s7 + $0x48] sm:$0xff]   ;;  %v4268_v16 = vld [vmem:[%s5677_s7 + $0x78] sm:$0xff]   ;;  %v4270_v17 = vld [vmem:[%s5677_s7 + $0xc0] sm:$0xff]  }
 0x34e   : > { %2583 = vmatmul.mubr.bf16.vlgmr.msra.gmra.mrb[0].mxu0 %v2153_v36  ;;  %v2140_v25 = vsel %vm1867_vm0, %v2097_v35, 0.0  ;;  %v2151_v39 = vsel %vm1867_vm0, %v2110_v40, 0.0  ;;  %v2142_v52 = vsel %vm1867_vm0, %v2103_v45, 0.0  ;;  %v4269_v18 = vld [vmem:[%s5677_s7 + $0x38] sm:$0xff]   ;;  %v4271_v19 = vld [vmem:[%s5677_s7 + $0x80] sm:$0xff]   ;;  %v4277_v27 = vld [vmem:[%s5677_s7 + $0xc8] sm:$0xff]  }
 0x34f   : > { %v2155_v50 = vpack.c.bf16 %v2131_v43, %v2131_v43  ;;  %3771 = vmatpush3.bf16.msra.mxu0 %v4239_v33  ;;  %v2150_v48 = vadd.f32 %v2149_v30, %v2148_v44  ;;  %v2141_v38 = vadd.f32 %v2140_v25, %v2139_v37  ;;  %v2144_v55 = vsel %vm1867_vm0, %v2109_v28, 0.0  ;;  %v4275_v20 = vld [vmem:[%s5677_s7 + $0x140] sm:$0xff]   ;;  %v4306_v31 = vld [vmem:[#allocation11 + $0xc] ss:$24 sps:$4 sm:$0xff]   ;;  %v4285_v40 = vld [vmem:[%s5677_s7 + $0xd8] sm:$0xff]  }
 0x350   : > { %3772 = vmatprep.subr.bf16.mxu0 %v4240_v41  ;;  %v4272_v32 = vld [vmem:[#allocation11] ss:$24 sps:$4 sm:$0xff]   ;;  %v4310_v22 = vld [vmem:[#allocation11 + $0x14] ss:$24 sps:$4 sm:$0xff]  }
 0x351   : > { %2623 = vmatmul.mubr.bf16.vlgmr.msra.gmra.mrb[0].mxu1 %v2155_v50  ;;  %v2152_v53 = vadd.f32 %v2151_v39, %v2150_v48  ;;  %v2143_v54 = vadd.f32 %v2142_v52, %v2141_v38  ;;  %v4276_v21 = vld [vmem:[%s5677_s7 + $0x100] sm:$0xff]   ;;  %v4278_v33 = vld [vmem:[%s5677_s7 + $0x88] sm:$0xff]   ;;  %v4281_v23 = vld [vmem:[%s5677_s7 + $0xd0] sm:$0xff]  }
 0x352   : > { %3793 = vmatpush3.bf16.msra.mxu1 %v4255_v47  ;;  %3152 = vmatprep.mubr.bf16.mxu1 %v4274_v49  ;;  %v4279_v34 = vld [vmem:[%s5677_s7 + $0x148] sm:$0xff]   ;;  %v4282_v36 = vld [vmem:[%s5677_s7 + $0x90] sm:$0xff]   ;;  %v4286_v41 = vld [vmem:[%s5677_s7 + $0x98] sm:$0xff]  }
 0x353   : > { %v2158_v57 = vpack.c.bf16 %v2152_v53, %v2152_v53  ;;  %3773 = vmatpush3.bf16.msra.mxu0 %v4241_v3  ;;  %v2145_v59 = vadd.f32 %v2144_v55, %v2143_v54  ;;  %3794 = vmatprep.subr.bf16.mxu1 %v4256_v26  ;;  %v4280_v35 = vld [vmem:[%s5677_s7 + $0x108] sm:$0xff]   ;;  %v4283_v51 = vld [vmem:[%s5677_s7 + $0x150] sm:$0xff]   ;;  %v4287_v43 = vld [vmem:[%s5677_s7 + $0x158] sm:$0xff]  }
 0x354   : > { %3774 = vmatprep.subr.bf16.mxu0 %v4242_v42  ;;  %v4284_v29 = vld [vmem:[%s5677_s7 + $0x110] sm:$0xff]   ;;  %v4289_v44 = vld [vmem:[%s5677_s7 + $0xe0] sm:$0xff]   ;;  %v4288_v45 = vld [vmem:[%s5677_s7 + $0x118] sm:$0xff]  }
 0x355   : > { %2662 = vmatprep.mubr.bf16.mxu0 %v2158_v57  ;;  %v2157_v24 = vpack.c.bf16 %v2145_v59, %v2145_v59  ;;  %v4290_v30 = vld [vmem:[%s5677_s7 + $0xa0] sm:$0xff]   ;;  %v4293_v37 = vld [vmem:[%s5677_s7 + $0xe8] sm:$0xff]   ;;  %v4297_v50 = vld [vmem:[%s5677_s7 + $0xf0] sm:$0xff]  }
 0x356   : > { %3795 = vmatpush3.bf16.msra.mxu1 %v4257_v56  ;;  %v4291_v28 = vld [vmem:[%s5677_s7 + $0x160] sm:$0xff]   ;;  %v4294_v47 = vld [vmem:[%s5677_s7 + $0xa8] sm:$0xff]   ;;  %v4298_v3 = vld [vmem:[%s5677_s7 + $0xb0] sm:$0xff]  }
 0x357   : > { %3775 = vmatpush3.bf16.msra.mxu0 %v4243_v58  ;;  %3796 = vmatprep.subr.bf16.mxu1 %v4258_v60  ;;  %v4292_v25 = vld [vmem:[%s5677_s7 + $0x120] sm:$0xff]   ;;  %v4295_v49 = vld [vmem:[%s5677_s7 + $0x168] sm:$0xff]   ;;  %v4299_v38 = vld [vmem:[%s5677_s7 + $0x170] sm:$0xff]  }
 0x358   : > { %3776 = vmatprep.subr.bf16.mxu0 %v4244_v61  ;;  %v4296_v48 = vld [vmem:[%s5677_s7 + $0x128] sm:$0xff]   ;;  %v4301_v26 = vld [vmem:[%s5677_s7 + $0xf8] sm:$0xff]   ;;  %v4300_v39 = vld [vmem:[%s5677_s7 + $0x130] sm:$0xff]  }
 0x359   : > { %v4302_v42 = vld [vmem:[%s5677_s7 + $0xb8] sm:$0xff]   ;;  %v4304_v53 = vld [vmem:[#allocation11 + $0x8] ss:$24 sps:$4 sm:$0xff]  }
 0x35a   : > { %3797 = vmatpush3.bf16.msra.mxu1 %v4259_v46  ;;  %v4303_v52 = vld [vmem:[%s5677_s7 + $0x178] sm:$0xff]  }
 0x35b   : > { %3777 = vmatpush3.bf16.msra.mxu0 %v4245_v62  ;;  %3798 = vmatprep.subr.bf16.mxu1 %v4260_v63  ;;  %v4307_v54 = vld [vmem:[%s5677_s7 + $0x138] sm:$0xff]  }
 0x35c   : > { %3778 = vmatprep.subr.bf16.mxu0 %v4246_v0  ;;  %v4308_v55 = vld [vmem:[#allocation11 + $0x10] ss:$24 sps:$4 sm:$0xff]  }
 0x35d   : > { %v3617_v57 = vld [vmem:[#allocation12] ss:$0 sm:$0xff] }
 0x35e   : > { %3799 = vmatpush3.bf16.msra.mxu1 %v4261_v1 }
 0x35f   : > { %3779 = vmatpush3.bf16.msra.mxu0 %v4247_v2  ;;  %3800 = vmatprep.subr.bf16.mxu1 %v4262_v4 }
 0x360   : > { %3780 = vmatprep.subr.bf16.mxu0 %v4248_v5 }
 0x362   : > { %3801 = vmatpush3.bf16.msra.mxu1 %v4263_v6 }
 0x363   : > { %3781 = vmatpush3.bf16.msra.mxu0 %v4249_v7  ;;  %3802 = vmatprep.subr.bf16.mxu1 %v4264_v8 }
 0x364   : > { %3782 = vmatprep.subr.bf16.mxu0 %v4250_v9 }
 0x366   : > { %3803 = vmatpush3.bf16.msra.mxu1 %v4265_v10 }
 0x367   : > { %3783 = vmatpush3.bf16.msra.mxu0 %v4251_v11  ;;  %3804 = vmatprep.subr.bf16.mxu1 %v4266_v12 }
 0x368   : > { %3784 = vmatprep.subr.bf16.mxu0 %v4252_v13 }
 0x36a   : > { %3805 = vmatpush3.bf16.msra.mxu1 %v4267_v14 }
 0x36b   : > { %3785 = vmatpush3.bf16.msra.mxu0 %v4253_v15  ;;  %3806 = vmatprep.subr.bf16.mxu1 %v4268_v16 }
 0x36c   : > { %3814 = vmatprep.subr.bf16.mxu0 %v4270_v17 }
 0x36e   : > { %2663 = vmatmul.mubr.bf16.vlgmr.msra.gmra.mrb[4].mxu0 %v2157_v24  ;;  %3807 = vmatpush3.bf16.msra.mxu1 %v4269_v18 }
 0x36f   : > { %3815 = vmatpush3.bf16.msra.mxu0 %v4271_v19  ;;  %3836 = vmatprep.subr.bf16.mxu1 %v4275_v20 }
 0x370   : > { %3816 = vmatprep.subr.bf16.mxu0 %v4277_v27  ;;  %3193 = vmatprep.mubr.bf16.mxu0 %v4306_v31 }
 0x371   : > { %3153 = vmatmul.mubr.bf16.vlgmr.msra.gmra.mrb[4].mxu1 %v4272_v32 }
 0x372   : > { %3837 = vmatpush3.bf16.msra.mxu1 %v4276_v21  ;;  %3234 = vmatprep.mubr.bf16.mxu1 %v4310_v22 }
 0x373   : > { %3817 = vmatpush3.bf16.msra.mxu0 %v4278_v33  ;;  %3838 = vmatprep.subr.bf16.mxu1 %v4279_v34 }
 0x374   : > { %3818 = vmatprep.subr.bf16.mxu0 %v4281_v23 }
 0x376   : > { %3839 = vmatpush3.bf16.msra.mxu1 %v4280_v35 }
 0x377   : > { %3819 = vmatpush3.bf16.msra.mxu0 %v4282_v36  ;;  %3840 = vmatprep.subr.bf16.mxu1 %v4283_v51 }
 0x378   : > { %3820 = vmatprep.subr.bf16.mxu0 %v4285_v40 }
 0x37a   : > { %3841 = vmatpush3.bf16.msra.mxu1 %v4284_v29 }
 0x37b   : > { %3821 = vmatpush3.bf16.msra.mxu0 %v4286_v41  ;;  %3842 = vmatprep.subr.bf16.mxu1 %v4287_v43 }
 0x37c   : > { %3822 = vmatprep.subr.bf16.mxu0 %v4289_v44 }
 0x37e   : > { %3843 = vmatpush3.bf16.msra.mxu1 %v4288_v45 }
 0x37f   : > { %3823 = vmatpush3.bf16.msra.mxu0 %v4290_v30  ;;  %3844 = vmatprep.subr.bf16.mxu1 %v4291_v28 }
 0x380   : > { %3824 = vmatprep.subr.bf16.mxu0 %v4293_v37 }
 0x382   : > { %3845 = vmatpush3.bf16.msra.mxu1 %v4292_v25 }
 0x383   : > { %3825 = vmatpush3.bf16.msra.mxu0 %v4294_v47  ;;  %3846 = vmatprep.subr.bf16.mxu1 %v4295_v49 }
 0x384   : > { %3826 = vmatprep.subr.bf16.mxu0 %v4297_v50 }
 0x386   : > { %3847 = vmatpush3.bf16.msra.mxu1 %v4296_v48 }
 0x387   : > { %3827 = vmatpush3.bf16.msra.mxu0 %v4298_v3  ;;  %3848 = vmatprep.subr.bf16.mxu1 %v4299_v38 }
 0x388   : > { %3828 = vmatprep.subr.bf16.mxu0 %v4301_v26 }
 0x38a   : > { %3849 = vmatpush3.bf16.msra.mxu1 %v4300_v39 }
 0x38b   : > { %3829 = vmatpush3.bf16.msra.mxu0 %v4302_v42  ;;  %3850 = vmatprep.subr.bf16.mxu1 %v4303_v52 }
 0x38e   : > { %3851 = vmatpush3.bf16.msra.mxu1 %v4307_v54  ;;  %3194 = vmatmul.mubr.bf16.vlgmr.msra.gmra.mrb[8].mxu0 %v4304_v53 }
 0x391   : > { %3235 = vmatmul.mubr.bf16.vlgmr.msra.gmra.mrb[8].mxu1 %v4308_v55  ;;  %v3284_v55 = vld [vmem:[%s5679_s9] sm:$0xff] }
 0x421   : > { %v3742_v56 = vpop.f32.mrb[0].mxu0 }
 0x422   : > { %v3743_v58 = vpop.f32.mrb[1].mxu0 }
 0x423   : > { %v3744_v59 = vadd.f32 %v3743_v58, %v3742_v56  ;;  %v3745_v60 = vpop.f32.mrb[2].mxu0 }
 0x424   : > { %v3764_v61 = vpop.f32.mrb[0].mxu1  ;;  %v3746_v46 = vpop.f32.mrb[3].mxu0 }
 0x425   : > { %v2585_v62 = vadd.f32 %v3744_v59, %v3617_v57  ;;  %v3765_v63 = vpop.f32.mrb[1].mxu1 }
 0x426   : > { %v3766_v0 = vadd.f32 %v3765_v63, %v3764_v61  ;;  %v3767_v1 = vpop.f32.mrb[2].mxu1 }
 0x427   : > { %v3768_v2 = vpop.f32.mrb[3].mxu1 }
 0x428   : > { %v2625_v4 = vadd.f32 %v3766_v0, %v2585_v62 }
 0x441   : > { %v3786_v5 = vpop.f32.mrb[4].mxu0 }
 0x442   : > { %v3787_v6 = vpop.f32.mrb[5].mxu0 }
 0x443   : > { %v3788_v7 = vadd.f32 %v3787_v6, %v3786_v5  ;;  %v3789_v8 = vpop.f32.mrb[6].mxu0 }
 0x444   : > { %v3790_v9 = vpop.f32.mrb[7].mxu0  ;;  %v3808_v12 = vpop.f32.mrb[4].mxu1 }
 0x445   : > { %v5605_v10 = vadd.f32 %v3788_v7, %v2625_v4  ;;  %v3809_v13 = vpop.f32.mrb[5].mxu1  ;;  %v4632_v9 = vmov 0.0  }
 0x446   : > { %v3810_v14 = vadd.f32 %v3809_v13, %v3808_v12  ;;  %v3811_v15 = vpop.f32.mrb[6].mxu1  ;;  %3319 = vst [vmem:[#allocation15] sm:$0xff] %v4632_v9 }
 0x447   : > { %v2671_v11 = vsel %vm2670_vm1, %v5605_v10, -inf  ;;  %v3812_v16 = vpop.f32.mrb[7].mxu1 }
 0x448   : > { %2672 = vmax.xlane.f32.xlu0 %v2671_v11  ;;  %v3813_v17 = vadd.f32 %v3812_v16, %v3811_v15 }
 0x461   : > { %v3830_v18 = vpop.f32.mrb[8].mxu0 }
 0x462   : > { %v3831_v19 = vpop.f32.mrb[9].mxu0 }
 0x463   : > { %v3832_v20 = vadd.f32 %v3831_v19, %v3830_v18  ;;  %v3833_v24 = vpop.f32.mrb[10].mxu0 }
 0x464   : > { %v3852_v27 = vpop.f32.mrb[8].mxu1  ;;  %v3834_v31 = vpop.f32.mrb[11].mxu0 }
 0x465   : > { %v3196_v32 = vadd.f32 %v3832_v20, %v3810_v14  ;;  %v3835_v21 = vadd.f32 %v3834_v31, %v3833_v24  ;;  %v3853_v22 = vpop.f32.mrb[9].mxu1 }
 0x466   : > { %v3854_v33 = vadd.f32 %v3853_v22, %v3852_v27  ;;  %v3855_v34 = vpop.f32.mrb[10].mxu1 }
 0x467   : > { %v3199_v23 = vadd.f32 %v3835_v21, %v3813_v17  ;;  %v3856_v35 = vpop.f32.mrb[11].mxu1 }
 0x468   : > { %v3237_v36 = vadd.f32 %v3854_v33, %v3196_v32  ;;  %v3857_v51 = vadd.f32 %v3856_v35, %v3855_v34  ;;  %v3285_v35 = vld [vmem:[%s5679_s9 + $0x8] sm:$0xff] }
 0x46a   : > { %v3244_v40 = vsel %vm3243_vm2, %v3237_v36, -inf  ;;  %v5610_v29 = vadd.f32 %v3857_v51, %v3199_v23 }
 0x46b   : > { %v3245_v41 = vrot.slane %v3244_v40, 4 }
 0x46c   : > { %v3251_v7 = vsel %vm3243_vm2, %v5610_v29, -inf }
 0x46d   : > { %v3246_v43 = vmax.f32 %v3244_v40, %v3245_v41  ;;  %v3252_v8 = vrot.slane %v3251_v7, 4 }
 0x46f   : > { %v3247_v44 = vrot.slane %v3246_v43, 2  ;;  %v3253_v11 = vmax.f32 %v3251_v7, %v3252_v8 }
 0x471   : > { %v3248_v45 = vmax.f32 %v3246_v43, %v3247_v44  ;;  %v3254_v12 = vrot.slane %v3253_v11, 2 }
 0x473   : > { %v3249_v30 = vrot.slane %v3248_v45, 1  ;;  %v3255_v13 = vmax.f32 %v3253_v11, %v3254_v12 }
 0x475   : > { %v3250_v28 = vmax.f32 %v3248_v45, %v3249_v30  ;;  %v3256_v14 = vrot.slane %v3255_v13, 1 }
 0x477   : > { %v3258_v37 = vsub.f32 %v3237_v36, %v3250_v28  ;;  %v3257_v15 = vmax.f32 %v3255_v13, %v3256_v14 }
 0x479   : > { %v3260_v25 = vmul.f32 1.442695, %v3258_v37  ;;  %v3259_v16 = vsub.f32 %v5610_v29, %v3257_v15 }
 0x47b   : > { %4321 = vpow2.f32 %v3260_v25  ;;  %v3262_v17 = vmul.f32 1.442695, %v3259_v16 }
 0x485   : > { %v4322_v47 = vpop.eup %4321 }
 0x486   : > { %v3264_v49 = vsel %vm3243_vm2, %v4322_v47, 0.0 }
 0x487   : > { %v3265_v50 = vrot.slane %v3264_v49, 4 }
 0x489   : > { %v3266_v48 = vadd.f32 %v3265_v50, %v3264_v49  ;;  %v1669_v49 = vld [vmem:[#allocation14] sm:$0x3] }
 0x48a   : > { %vm3314_vm3 = vcmp.eq.f32.partialorder %v1669_v49, 1.0 }
 0x48b   : > { %v3267_v3 = vrot.slane %v3266_v48, 2 }
 0x48d   : > { %v3268_v38 = vadd.f32 %v3267_v3, %v3266_v48 }
 0x48f   : > { %v3269_v26 = vrot.slane %v3268_v38, 1 }
 0x491   : > { %v3270_v39 = vadd.f32 %v3269_v26, %v3268_v38 }
 0x493   : > { %4323 = vlog2.f32 %v3270_v39 }
 0x49d   : > { %v4324_v42 = vpop.eup %4323 }
 0x49e   : > { %v3279_v52 = vmul.f32 0.6931472, %v4324_v42 }
 0x4a0   : > { %v3282_v53 = vadd.f32 %v3279_v52, %v3250_v28 }
 0x4a2   : > { %v3286_v54 = vsub.f32 %v3237_v36, %v3282_v53 }
 0x4a4   : > { %v3288_v56 = vmul.f32 %v3286_v54, %v3284_v55 }
 0x4a6   : > { %v3290_v57 = vsel %vm3243_vm2, %v3288_v56, 0.0 }
 0x4a7   : > { %v3291_v58 = vrot.slane %v3290_v57, 4 }
 0x4a9   : > { %v3292_v59 = vadd.f32 %v3291_v58, %v3290_v57 }
 0x4ab   : > { %v3293_v60 = vrot.slane %v3292_v59, 2 }
 0x4ad   : > { %v3294_v62 = vadd.f32 %v3293_v60, %v3292_v59 }
 0x4af   : > { %v3295_v0 = vrot.slane %v3294_v62, 1 }
 0x4b1   : > { %v3296_v1 = vadd.f32 %v3295_v0, %v3294_v62 }
 0x4b3   : > { %v3304_v2 = vsub.f32 0.0, %v3296_v1 }
 0x4b5   : > { %v3306_v6 = vsel %vm3243_vm2, %v3304_v2, 0.0 }
 0x4d5   : > { %v2673_v61 = vpop.xlane.xlu0 %2672 }
 0x4d6   : > { %v2674_v46 = vsub.f32 %v5605_v10, %v2673_v61 }
 0x4d8   : > { %v2675_v63 = vmul.f32 1.442695, %v2674_v46  ;;  %v3720_v46 = vsel %vm3314_vm3, 1.0, %v4632_v9 }
 0x4da   : > { %4325 = vpow2.f32 %v2675_v63 }
 0x4db   : > { %4327 = vpow2.f32 %v3262_v17 }
 0x4e4   : > { %v4326_v4 = vpop.eup %4325 }
 0x4e5   : > { %v2677_v5 = vsel %vm2670_vm1, %v4326_v4, 0.0  ;;  %v4328_v18 = vpop.eup %4327 }
 0x4e6   : > { %2678 = vadd.xlane.f32.xlu1 %v2677_v5  ;;  %v3271_v19 = vsel %vm3243_vm2, %v4328_v18, 0.0 }
 0x4e7   : > { %v3272_v20 = vrot.slane %v3271_v19, 4 }
 0x4e9   : > { %v3273_v24 = vadd.f32 %v3272_v20, %v3271_v19 }
 0x4ea   : > { %3307 = vadd.xlane.f32.xlu1 %v3306_v6 }
 0x4eb   : > { %v3274_v27 = vrot.slane %v3273_v24, 2 }
 0x4ed   : > { %v3275_v31 = vadd.f32 %v3274_v27, %v3273_v24 }
 0x4ef   : > { %v3276_v32 = vrot.slane %v3275_v31, 1 }
 0x4f1   : > { %v3277_v21 = vadd.f32 %v3276_v32, %v3275_v31 }
 0x4f3   : > { %4329 = vlog2.f32 %v3277_v21 }
 0x4fd   : > { %v4330_v22 = vpop.eup %4329 }
 0x4fe   : > { %v3281_v33 = vmul.f32 0.6931472, %v4330_v22 }
 0x500   : > { %v3283_v34 = vadd.f32 %v3281_v33, %v3257_v15 }
 0x502   : > { %v3287_v23 = vsub.f32 %v5610_v29, %v3283_v34 }
 0x504   : > { %v3289_v36 = vmul.f32 %v3287_v23, %v3285_v35 }
 0x506   : > { %v3297_v51 = vsel %vm3243_vm2, %v3289_v36, 0.0 }
 0x507   : > { %v3298_v40 = vrot.slane %v3297_v51, 4 }
 0x509   : > { %v3299_v43 = vadd.f32 %v3298_v40, %v3297_v51 }
 0x50b   : > { %v3300_v44 = vrot.slane %v3299_v43, 2 }
 0x50d   : > { %v3301_v45 = vadd.f32 %v3300_v44, %v3299_v43 }
 0x50f   : > { %v3302_v47 = vrot.slane %v3301_v45, 1 }
 0x511   : > { %v3303_v48 = vadd.f32 %v3302_v47, %v3301_v45 }
 0x513   : > { %v3305_v26 = vsub.f32 0.0, %v3303_v48 }
 0x515   : > { %v3309_v39 = vsel %vm3243_vm2, %v3305_v26, 0.0 }
 0x573   : > { %v2679_v41 = vpop.xlane.xlu1 %2678 }
 0x574   : > { %4331 = vrcp.f32 %v2679_v41 }
 0x575   : > { %4333 = vlog2.f32 %v2679_v41 }
 0x577   : > { %v3308_v57 = vpop.xlane.xlu1 %3307 }
 0x57e   : > { %v4332_v30 = vpop.eup %4331 }
 0x57f   : > { %v4334_v28 = vpop.eup %4333  ;;  %v2681_v37 = vmul.f32 %v4332_v30, %v4326_v4 }
 0x580   : > { %v2683_v25 = vmul.f32 0.6931472, %v4334_v28 }
 0x581   : > { %3320 = vst.msk [vmem:[#allocation15] sm:$0x3] %vm2670_vm1, %v2681_v37 }
 0x582   : > { %v2684_v29 = vadd.f32 %v2683_v25, %v2673_v61 }
 0x584   : > { %v2685_v50 = vsub.f32 %v5605_v10, %v2684_v29 }
 0x586   : > { %v2686_v3 = vmul.f32 %v2685_v50, %v1669_v49 }
 0x588   : > { %v2687_v38 = vsel %vm2670_vm1, %v2686_v3, 0.0 }
 0x589   : > { %2688 = vadd.xlane.f32.xlu0 %v2687_v38 }
 0x58d   : > { %3310 = vadd.xlane.f32.xlu0 %v3309_v39 }
 0x616   : > { %v2689_v42 = vpop.xlane.xlu0 %2688 }
 0x617   : > { %v2690_v52 = vsub.f32 0.0, %v2689_v42 }
 0x619   : > { %v2691_v53 = vsel %vm1867_vm0, %v2690_v52, 0.0 }
 0x61a   : > { %v2692_v54 = vrot.slane %v2691_v53, 4  ;;  %v3311_v55 = vpop.xlane.xlu0 %3310 }
 0x61b   : > { %v3312_v59 = vadd.f32 %v3311_v55, %v3308_v57 }
 0x61c   : > { %v2693_v56 = vadd.f32 %v2692_v54, %v2691_v53 }
 0x61d   : > { %v3313_v61 = vmul.f32 0.5, %v3312_v59 }
 0x61e   : > { %v2694_v58 = vrot.slane %v2693_v56, 2 }
 0x61f   : > { %v3317_v63 = vmul.f32 %v3720_v46, %v3313_v61 }
 0x620   : > { %v2695_v10 = vadd.f32 %v2694_v58, %v2693_v56 }
 0x622   : > { %v2696_v60 = vrot.slane %v2695_v10, 1 }
 0x624   : > { %v2697_v62 = vadd.f32 %v2696_v60, %v2695_v10 }
 0x626   : > { %v2699_v0 = vmul.f32 0.5, %v2697_v62 }
 0x628   : > { %v3318_v1 = vadd.f32 %v3317_v63, %v2699_v0 }
 0x62a   : > { %3322 = vrot.lane.b32.xlu1 %v3318_v1, %s4633_s21 }
 0x69c   : > { %v3323_v2 = vpop.permute.xlu1 %3322 }
 0x69d   : > { %3326 = vst.msk [vmem:[#allocation15 + $0x2] sm:$0x1] %vm3325_vm4, %v3323_v2 }
 0x69e PF: > { %p3936_p2 = scmp.eq.s32.totalorder %s4711_s19, 1  ;;  %s4634_s22 = smov [#allocation15]  }
 0x69f   : > { %s3334_s20 = sshll.u32 %s4634_s22, 4  ;;  %s3335_s20 = int_to_ptr.vmem [resolvable:$true] %s3334_s20 }
 0x6a0   : > { %s4535_s12 = scalar_lea.vmem %s3335_s20, 128  ;;  %p4542_p11 = scmp.lt.s32.totalorder %s3335_s20, %s3335_s20 }
 0x6a1   : > { %p4536_p9 = scmp.ne.s32.totalorder %s3335_s20, %s4535_s12  ;;  %p4543_p13 = scmp.lt.s32.totalorder %s4535_s12, %s4535_s12 }
 0x6a3   : > { %p4537_p1 = pnand %p4536_p9, %p3936_p2  ;;  %p4544_p6 = por %p4543_p13, %p4542_p11 }
 0x6a5   : > { %p4538_p4 = pneg %p4537_p1 }
 0x6a7   : > { %p4545_p3 = pnand %p4544_p6, %p4538_p4 }
 0x6a9   : > { %4548 = shalt.err (!%p4545_p3)
}
 0x6aa   : > { %s4549_s23 = scalar_lea.hbm %s5680_s10, 128 }
 0x6ab   : > { %p4550_p12 = scmp.ne.s32.totalorder %s5680_s10, %s4549_s23  ;;  %p4555_p8 = scmp.lt.u32.totalorder %s4549_s23, %s5680_s10 }
 0x6ad   : > { %p4551_p0 = pnand %p4550_p12, %p3936_p2 }
 0x6af   : > { %p4552_p5 = pneg %p4551_p0 }
 0x6b1   : > { %p4557_p10 = pnand %p4555_p8, %p4552_p5 }
 0x6b3   : > { %4560 = shalt.err (!%p4557_p10)
}
 0x6b4   : > { %3898 = dma.vmem_to_hbm [thread:$0]  (%p3936_p2), %s3335_s20, 128, %s5680_s10, [#allocation5]  }
 0x6b5   : > { %4598 = dma.done.wait (%p3936_p2), [#allocation5], 128  }
 0x6b6   : > { %4600 = vsyncadd (%p3936_p2), [#allocation5], 4294967168 }
 0x6b7 PF: > { %p26_p7 = scmp.ge.s32.totalorder %s4844_s3, 4   ;;  %s5707_s13 = smov %s4607_s14 }
 0x6b8   : > { %s5708_s14 = smov %s4611_s15  ;;  %s5709_s15 = smov %s4855_s29 }
 0x6b9   : > { %s5710_s16 = smov %s4844_s3  ;;  %28 = sbr.rel (!%p26_p7) target bundleno = 12 (0xc), region = 138 }
 0x6c0   :  { %3347 = vsyncpa [#allocation4], 1 }
 0x6c1   :  { %3349 = vsyncpa [#allocation4 + $0x1], 1 }
 0x6c2   :  { %3350 = vsyncpa [#allocation7], 1 }
 0x6c3   :  { %3352 = vsyncpa [#allocation7 + $0x1], 1 }
 0x6c4   :  { %3353 = vsyncpa [#allocation10], 1 }
 0x6c5   :  { %3354 = vsyncpa [#allocation13], 1 }
 0x6c6   :  { %3355 = vsyncpa [#allocation5], 1 }
 0x6c7   :  { %3357 = vsyncpa [#allocation5 + $0x1], 1 }

</bundles_post_ra>
